<compile_context>
chip_gen: v6e
topology: v6e:2x2x1
jax: 0.10.0
libtpu: 0.0.40
codegen_flags: <defaults>
</compile_context>

<pallas_src>
import functools
import math

import jax
import jax.numpy as jnp
from jax.experimental import pallas as pl
from jax.experimental.pallas import tpu as pltpu

NUM_HEADS = 5  # the SelfAttention module hard-codes 5 attention heads


# ----------------------------- Pallas kernels ------------------------------ #

def _attention_kernel(x_ref, wq_ref, wk_ref, att_ref, sum_ref, sq_ref):
    """x_ref: (R, C*D); wq_ref: (C*D, 5*Dk); wk_ref: (D, 5*Dk).
    att_ref: (R, 5*D); sum_ref / sq_ref: (1, 5*D) per-tile partial BN stats."""
    D = wk_ref.shape[0]
    C = x_ref.shape[1] // D
    Dk = wk_ref.shape[1] // NUM_HEADS
    scale = 1.0 / math.sqrt(Dk)

    x = x_ref[...]
    wk = wk_ref[...]
    # Q for all heads at once: (R, C*D) @ (C*D, 5*Dk)
    q = jnp.dot(x, wq_ref[...], preferred_element_type=jnp.float32)
    xs = [x[:, c * D:(c + 1) * D] for c in range(C)]
    # K*Q per channel (all heads at once): (R, D) @ (D, 5*Dk)
    kq = [jnp.dot(xs[c], wk, preferred_element_type=jnp.float32) * q for c in range(C)]

    att_heads = []
    for h in range(NUM_HEADS):
        lo, hi = h * Dk, (h + 1) * Dk
        # QK[r, c] for this head, scaled by Dk**-0.5
        qk = [jnp.sum(kq[c][:, lo:hi], axis=-1, keepdims=True) * scale for c in range(C)]
        m = qk[0]
        for c in range(1, C):
            m = jnp.maximum(m, qk[c])
        es = [jnp.exp(qk[c] - m) for c in range(C)]
        s = es[0]
        for c in range(1, C):
            s = s + es[c]
        acc = es[0] * xs[0]
        for c in range(1, C):
            acc = acc + es[c] * xs[c]
        # Deferred softmax normalization: one multiply by the (approx, EUP) reciprocal.
        att_heads.append(acc * pl.reciprocal(s, approx=True))

    att = jnp.concatenate(att_heads, axis=-1)          # (R, 5*D)
    att_ref[...] = att                                  # single lane-dense store
    sum_ref[...] = jnp.sum(att, axis=0, keepdims=True)  # partial BN statistics
    sq_ref[...] = jnp.sum(att * att, axis=0, keepdims=True)


def _gates_kernel(att_ref, w_ref, b_ref, o_ref):
    """Hoisted LSTM input projection with BN folded in: (R, Feat) @ (Feat, 4H) + b."""
    o_ref[...] = (jnp.dot(att_ref[...], w_ref[...], preferred_element_type=jnp.float32)
                  + b_ref[...])


def _lstm_head_kernel(gates_ref, whh_ref, wout_ref, bout_ref, labels_ref,
                      loss_ref, prob_ref):
    """One batch element per program.  gates_ref: (L, 4H) = x_t @ W_eff + b_eff.
    In-kernel time loop (only h @ W_hh + nonlinearities per step); the Linear(H,1)
    head, sigmoid and per-example BCE-with-logits term are fused in the epilogue."""
    n = pl.program_id(0)
    L = gates_ref.shape[0]
    H = whh_ref.shape[0]

    def step(t, carry):
        h, c = carry
        g = gates_ref[pl.ds(t, 1), :] + jnp.dot(
            h, whh_ref[...], preferred_element_type=jnp.float32)       # (1, 4H)
        i = jax.nn.sigmoid(g[:, 0:H])
        f = jax.nn.sigmoid(g[:, H:2 * H])
        gg = jnp.tanh(g[:, 2 * H:3 * H])
        o = jax.nn.sigmoid(g[:, 3 * H:4 * H])
        c = f * c + i * gg
        h = o * jnp.tanh(c)
        return h, c

    h0 = jnp.zeros((1, H), jnp.float32)
    c0 = jnp.zeros((1, H), jnp.float32)
    h, _ = jax.lax.fori_loop(0, L, step, (h0, c0), unroll=(L <= 64))

    z = jnp.dot(h, wout_ref[...], preferred_element_type=jnp.float32) + bout_ref[...]
    y = labels_ref[pl.ds(n, 1), :]                                      # (1, 1)
    loss_ref[...] = jnp.maximum(z, 0.0) - z * y + jnp.log1p(jnp.exp(-jnp.abs(z)))
    prob_ref[...] = jax.nn.sigmoid(z)


# ------------------------------- model glue -------------------------------- #

def _pick_row_block(n_rows, max_rows=512):
    """Largest multiple-of-8 divisor of n_rows up to max_rows (else n_rows itself)."""
    if n_rows <= max_rows or n_rows % 8 != 0:
        return n_rows
    blk = max_rows - max_rows % 8
    while blk >= 8:
        if n_rows % blk == 0:
            return blk
        blk -= 8
    return n_rows


def init_params(key, *, D, Dk, C, H):
    Feat = NUM_HEADS * D
    ks = jax.random.split(key, 8)

    def unif(k, shape, bound):
        return jax.random.uniform(k, shape, jnp.float32, -bound, bound)

    return {
        # SelfAttention, heads packed along the last dim:
        #   W_q* ~ U(-1/sqrt(C), .), W_k* ~ U(-1/sqrt(D), .)
        "wq": unif(ks[0], (C * D, NUM_HEADS * Dk), 1.0 / math.sqrt(C)),
        "wk": unif(ks[1], (D, NUM_HEADS * Dk), 1.0 / math.sqrt(D)),
        # BatchNorm1d(5*D): default affine init
        "bn_gamma": jnp.ones((Feat,), jnp.float32),
        "bn_beta": jnp.zeros((Feat,), jnp.float32),
        # LSTM(5*D -> H): weights stored pre-transposed; biases combined
        "w_ih": unif(ks[2], (Feat, 4 * H), 1.0 / math.sqrt(H)),
        "w_hh": unif(ks[3], (H, 4 * H), 1.0 / math.sqrt(H)),
        "b": unif(ks[4], (1, 4 * H), 1.0 / math.sqrt(H))
             + unif(ks[5], (1, 4 * H), 1.0 / math.sqrt(H)),
        # Linear(H, 1)
        "w_out": unif(ks[6], (H, 1), 1.0 / math.sqrt(H)),
        "b_out": unif(ks[7], (1, 1), 1.0 / math.sqrt(H)),
    }


def model_forward(params, data, labels, *, Tot, C):
    N, _, D = data.shape
    L = Tot // C
    assert L >= 1, "LSTM needs at least one time step"
    Feat = NUM_HEADS * D
    H = params["w_hh"].shape[0]
    NL = N * L

    # (N, Tot, D) -> (N*L, C*D): pure reshape, no HBM transpose.
    x2d = data.reshape(NL, C * D)

    blk = _pick_row_block(NL)
    n_tiles = NL // blk
    parallel1 = pltpu.CompilerParams(dimension_semantics=("parallel",))

    # --- fused SelfAttention (wide matmuls) + partial BatchNorm statistics ----
    att, att_sum, att_sq = pl.pallas_call(
        _attention_kernel,
        grid=(n_tiles,),
        in_specs=[
            pl.BlockSpec((blk, C * D), lambda i: (i, 0)),
            pl.BlockSpec(params["wq"].shape, lambda i: (0, 0)),
            pl.BlockSpec(params["wk"].shape, lambda i: (0, 0)),
        ],
        out_specs=[
            pl.BlockSpec((blk, Feat), lambda i: (i, 0)),
            pl.BlockSpec((None, 1, Feat), lambda i: (i, 0, 0)),
            pl.BlockSpec((None, 1, Feat), lambda i: (i, 0, 0)),
        ],
        out_shape=(
            jax.ShapeDtypeStruct((NL, Feat), jnp.float32),
            jax.ShapeDtypeStruct((n_tiles, 1, Feat), jnp.float32),
            jax.ShapeDtypeStruct((n_tiles, 1, Feat), jnp.float32),
        ),
        compiler_params=parallel1,
    )(x2d, params["wq"], params["wk"])

    # --- finalize BN stats (training mode, biased var) and fold BN into W_ih ---
    mean = jnp.sum(att_sum, axis=(0, 1)) / NL                          # (Feat,)
    var = jnp.maximum(jnp.sum(att_sq, axis=(0, 1)) / NL - mean * mean, 0.0)
    scale = params["bn_gamma"] * jax.lax.rsqrt(var + 1e-5)
    shift = params["bn_beta"] - mean * scale
    w_eff = scale[:, None] * params["w_ih"]                            # (Feat, 4H)
    b_eff = params["b"] + shift[None, :] @ params["w_ih"]              # (1, 4H)

    # --- hoisted LSTM input projection for all timesteps (one big matmul) -----
    gates = pl.pallas_call(
        _gates_kernel,
        grid=(n_tiles,),
        in_specs=[
            pl.BlockSpec((blk, Feat), lambda i: (i, 0)),
            pl.BlockSpec((Feat, 4 * H), lambda i: (0, 0)),
            pl.BlockSpec((1, 4 * H), lambda i: (0, 0)),
        ],
        out_specs=pl.BlockSpec((blk, 4 * H), lambda i: (i, 0)),
        out_shape=jax.ShapeDtypeStruct((NL, 4 * H), jnp.float32),
        compiler_params=parallel1,
    )(att, w_eff, b_eff)

    # (N*L, 4H) -> (N, L, 4H): pure reshape (rows are (n, l)-ordered).
    gates3 = gates.reshape(N, L, 4 * H)

    # --- LSTM recurrence + fused head (Linear + sigmoid + BCE terms) ----------
    per_loss, probs = pl.pallas_call(
        _lstm_head_kernel,
        grid=(N,),
        in_specs=[
            pl.BlockSpec((None, L, 4 * H), lambda n: (n, 0, 0)),
            pl.BlockSpec((H, 4 * H), lambda n: (0, 0)),
            pl.BlockSpec((H, 1), lambda n: (0, 0)),
            pl.BlockSpec((1, 1), lambda n: (0, 0)),
            pl.BlockSpec((N, 1), lambda n: (0, 0)),
        ],
        out_specs=[
            pl.BlockSpec((None, 1, 1), lambda n: (n, 0, 0)),
            pl.BlockSpec((None, 1, 1), lambda n: (n, 0, 0)),
        ],
        out_shape=(
            jax.ShapeDtypeStruct((N, 1, 1), jnp.float32),
            jax.ShapeDtypeStruct((N, 1, 1), jnp.float32),
        ),
        compiler_params=parallel1,
    )(gates3, params["w_hh"], params["w_out"], params["b_out"], labels)

    y_loss = jnp.mean(per_loss)          # BCE-with-logits, mean reduction
    y_h = probs.reshape(N, 1)
    return y_loss, y_h, 1.0


if __name__ == "__main__":
    # Small, module-consistent shapes: batch=2, Tot(T)=8, nei(C)=2, D=16, Dk=8, hidden=32
    N, Tot, C, D, Dk, H = 2, 8, 2, 16, 8, 32

    key = jax.random.PRNGKey(0)
    kp, kd, kl = jax.random.split(key, 3)

    params = init_params(kp, D=D, Dk=Dk, C=C, H=H)
    data = jax.random.normal(kd, (N, Tot, D), jnp.float32)           # (N, T, D)
    labels = (jax.random.uniform(kl, (N, 1)) > 0.5).astype(jnp.float32)

    fwd = jax.jit(functools.partial(model_forward, Tot=Tot, C=C))
    y_loss, y_h, _ = fwd(params, data, labels)
    jax.block_until_ready((y_loss, y_h))

    assert y_h.shape == (N, 1) and y_loss.shape == ()
    assert bool(jnp.isfinite(y_loss))
    print("KERNEL_OK")
</pallas_src>

<mosaic_0001>
module attributes {stable_mosaic.version = 11 : i64} {
  func.func @_attention_kernel(%arg0: i32, %arg1: memref<8x32xf32, #tpu.memory_space<vmem>>, %arg2: memref<32x40xf32, #tpu.memory_space<vmem>>, %arg3: memref<16x40xf32, #tpu.memory_space<vmem>>, %arg4: memref<8x80xf32, #tpu.memory_space<vmem>>, %arg5: memref<1x1x80xf32, #tpu.memory_space<vmem>>, %arg6: memref<1x1x80xf32, #tpu.memory_space<vmem>>) attributes {dimension_semantics = [#tpu.dimension_semantics<parallel>], iteration_bounds = array<i64: 1>, scalar_prefetch = 0 : i64, scratch_operands = 0 : i64, tpu.core_type = #tpu.core_type<tc>, window_params = [{transform_indices = @transform_0, window_bounds = array<i64: 8, 32>}, {pipeline_mode = #tpu.pipeline_mode<synchronous>, transform_indices = @transform_1, window_bounds = array<i64: 32, 40>}, {pipeline_mode = #tpu.pipeline_mode<synchronous>, transform_indices = @transform_2, window_bounds = array<i64: 16, 40>}, {transform_indices = @transform_3, window_bounds = array<i64: 8, 80>}, {transform_indices = @transform_4, window_bounds = array<i64: 1, 1, 80>}, {transform_indices = @transform_5, window_bounds = array<i64: 1, 1, 80>}]} {
    %c0 = arith.constant 0 : index
    %c0_0 = arith.constant 0 : index
    %0 = vector.load %arg1[%c0, %c0_0] : memref<8x32xf32, #tpu.memory_space<vmem>>, vector<8x32xf32>
    %c0_1 = arith.constant 0 : index
    %c0_2 = arith.constant 0 : index
    %1 = vector.load %arg3[%c0_1, %c0_2] : memref<16x40xf32, #tpu.memory_space<vmem>>, vector<16x40xf32>
    %c0_3 = arith.constant 0 : index
    %c0_4 = arith.constant 0 : index
    %2 = vector.load %arg2[%c0_3, %c0_4] : memref<32x40xf32, #tpu.memory_space<vmem>>, vector<32x40xf32>
    %cst = arith.constant dense<0.000000e+00> : vector<8x40xf32>
    %3 = tpu.matmul %0, %2, %cst {dimension_numbers = #tpu.dot_dimension_numbers<[1], [0], [0], [1], [0, 0, 1, 1], [], []>} : vector<8x32xf32>, vector<32x40xf32>, vector<8x40xf32> -> vector<8x40xf32>
    %4 = vector.extract_strided_slice %0 {offsets = [0, 0], sizes = [8, 16], strides = [1, 1]} : vector<8x32xf32> to vector<8x16xf32>
    %5 = vector.extract_strided_slice %0 {offsets = [0, 16], sizes = [8, 16], strides = [1, 1]} : vector<8x32xf32> to vector<8x16xf32>
    %cst_5 = arith.constant dense<0.000000e+00> : vector<8x40xf32>
    %6 = tpu.matmul %4, %1, %cst_5 {dimension_numbers = #tpu.dot_dimension_numbers<[1], [0], [0], [1], [0, 0, 1, 1], [], []>} : vector<8x16xf32>, vector<16x40xf32>, vector<8x40xf32> -> vector<8x40xf32>
    %7 = arith.mulf %6, %3 : vector<8x40xf32>
    %cst_6 = arith.constant dense<0.000000e+00> : vector<8x40xf32>
    %8 = tpu.matmul %5, %1, %cst_6 {dimension_numbers = #tpu.dot_dimension_numbers<[1], [0], [0], [1], [0, 0, 1, 1], [], []>} : vector<8x16xf32>, vector<16x40xf32>, vector<8x40xf32> -> vector<8x40xf32>
    %9 = arith.mulf %8, %3 : vector<8x40xf32>
    %10 = vector.extract_strided_slice %7 {offsets = [0, 0], sizes = [8, 8], strides = [1, 1]} : vector<8x40xf32> to vector<8x8xf32>
    %cst_7 = arith.constant dense<0.000000e+00> : vector<8xf32>
    %11 = vector.multi_reduction <add>, %10, %cst_7 [1] : vector<8x8xf32> to vector<8xf32>
    %12 = vector.shape_cast %11 : vector<8xf32> to vector<8x1xf32>
    %cst_8 = arith.constant 0.353553385 : f32
    %13 = vector.broadcast %cst_8 : f32 to vector<8x1xf32>
    %14 = arith.mulf %12, %13 : vector<8x1xf32>
    %15 = vector.extract_strided_slice %9 {offsets = [0, 0], sizes = [8, 8], strides = [1, 1]} : vector<8x40xf32> to vector<8x8xf32>
    %cst_9 = arith.constant dense<0.000000e+00> : vector<8xf32>
    %16 = vector.multi_reduction <add>, %15, %cst_9 [1] : vector<8x8xf32> to vector<8xf32>
    %17 = vector.shape_cast %16 : vector<8xf32> to vector<8x1xf32>
    %cst_10 = arith.constant 0.353553385 : f32
    %18 = vector.broadcast %cst_10 : f32 to vector<8x1xf32>
    %19 = arith.mulf %17, %18 : vector<8x1xf32>
    %20 = arith.maximumf %14, %19 : vector<8x1xf32>
    %21 = arith.subf %14, %20 : vector<8x1xf32>
    %22 = math.exp %21 : vector<8x1xf32>
    %23 = arith.subf %19, %20 : vector<8x1xf32>
    %24 = math.exp %23 : vector<8x1xf32>
    %25 = arith.addf %22, %24 : vector<8x1xf32>
    %26 = vector.broadcast %22 : vector<8x1xf32> to vector<8x16xf32>
    %27 = arith.mulf %26, %4 : vector<8x16xf32>
    %28 = vector.broadcast %24 : vector<8x1xf32> to vector<8x16xf32>
    %29 = arith.mulf %28, %5 : vector<8x16xf32>
    %30 = arith.addf %27, %29 : vector<8x16xf32>
    %31 = tpu.reciprocal %25 {approx = true} : vector<8x1xf32> -> vector<8x1xf32>
    %32 = vector.broadcast %31 : vector<8x1xf32> to vector<8x16xf32>
    %33 = arith.mulf %30, %32 : vector<8x16xf32>
    %34 = vector.extract_strided_slice %7 {offsets = [0, 8], sizes = [8, 8], strides = [1, 1]} : vector<8x40xf32> to vector<8x8xf32>
    %cst_11 = arith.constant dense<0.000000e+00> : vector<8xf32>
    %35 = vector.multi_reduction <add>, %34, %cst_11 [1] : vector<8x8xf32> to vector<8xf32>
    %36 = vector.shape_cast %35 : vector<8xf32> to vector<8x1xf32>
    %cst_12 = arith.constant 0.353553385 : f32
    %37 = vector.broadcast %cst_12 : f32 to vector<8x1xf32>
    %38 = arith.mulf %36, %37 : vector<8x1xf32>
    %39 = vector.extract_strided_slice %9 {offsets = [0, 8], sizes = [8, 8], strides = [1, 1]} : vector<8x40xf32> to vector<8x8xf32>
    %cst_13 = arith.constant dense<0.000000e+00> : vector<8xf32>
    %40 = vector.multi_reduction <add>, %39, %cst_13 [1] : vector<8x8xf32> to vector<8xf32>
    %41 = vector.shape_cast %40 : vector<8xf32> to vector<8x1xf32>
    %cst_14 = arith.constant 0.353553385 : f32
    %42 = vector.broadcast %cst_14 : f32 to vector<8x1xf32>
    %43 = arith.mulf %41, %42 : vector<8x1xf32>
    %44 = arith.maximumf %38, %43 : vector<8x1xf32>
    %45 = arith.subf %38, %44 : vector<8x1xf32>
    %46 = math.exp %45 : vector<8x1xf32>
    %47 = arith.subf %43, %44 : vector<8x1xf32>
    %48 = math.exp %47 : vector<8x1xf32>
    %49 = arith.addf %46, %48 : vector<8x1xf32>
    %50 = vector.broadcast %46 : vector<8x1xf32> to vector<8x16xf32>
    %51 = arith.mulf %50, %4 : vector<8x16xf32>
    %52 = vector.broadcast %48 : vector<8x1xf32> to vector<8x16xf32>
    %53 = arith.mulf %52, %5 : vector<8x16xf32>
    %54 = arith.addf %51, %53 : vector<8x16xf32>
    %55 = tpu.reciprocal %49 {approx = true} : vector<8x1xf32> -> vector<8x1xf32>
    %56 = vector.broadcast %55 : vector<8x1xf32> to vector<8x16xf32>
    %57 = arith.mulf %54, %56 : vector<8x16xf32>
    %58 = vector.extract_strided_slice %7 {offsets = [0, 16], sizes = [8, 8], strides = [1, 1]} : vector<8x40xf32> to vector<8x8xf32>
    %cst_15 = arith.constant dense<0.000000e+00> : vector<8xf32>
    %59 = vector.multi_reduction <add>, %58, %cst_15 [1] : vector<8x8xf32> to vector<8xf32>
    %60 = vector.shape_cast %59 : vector<8xf32> to vector<8x1xf32>
    %cst_16 = arith.constant 0.353553385 : f32
    %61 = vector.broadcast %cst_16 : f32 to vector<8x1xf32>
    %62 = arith.mulf %60, %61 : vector<8x1xf32>
    %63 = vector.extract_strided_slice %9 {offsets = [0, 16], sizes = [8, 8], strides = [1, 1]} : vector<8x40xf32> to vector<8x8xf32>
    %cst_17 = arith.constant dense<0.000000e+00> : vector<8xf32>
    %64 = vector.multi_reduction <add>, %63, %cst_17 [1] : vector<8x8xf32> to vector<8xf32>
    %65 = vector.shape_cast %64 : vector<8xf32> to vector<8x1xf32>
    %cst_18 = arith.constant 0.353553385 : f32
    %66 = vector.broadcast %cst_18 : f32 to vector<8x1xf32>
    %67 = arith.mulf %65, %66 : vector<8x1xf32>
    %68 = arith.maximumf %62, %67 : vector<8x1xf32>
    %69 = arith.subf %62, %68 : vector<8x1xf32>
    %70 = math.exp %69 : vector<8x1xf32>
    %71 = arith.subf %67, %68 : vector<8x1xf32>
    %72 = math.exp %71 : vector<8x1xf32>
    %73 = arith.addf %70, %72 : vector<8x1xf32>
    %74 = vector.broadcast %70 : vector<8x1xf32> to vector<8x16xf32>
    %75 = arith.mulf %74, %4 : vector<8x16xf32>
    %76 = vector.broadcast %72 : vector<8x1xf32> to vector<8x16xf32>
    %77 = arith.mulf %76, %5 : vector<8x16xf32>
    %78 = arith.addf %75, %77 : vector<8x16xf32>
    %79 = tpu.reciprocal %73 {approx = true} : vector<8x1xf32> -> vector<8x1xf32>
    %80 = vector.broadcast %79 : vector<8x1xf32> to vector<8x16xf32>
    %81 = arith.mulf %78, %80 : vector<8x16xf32>
    %82 = vector.extract_strided_slice %7 {offsets = [0, 24], sizes = [8, 8], strides = [1, 1]} : vector<8x40xf32> to vector<8x8xf32>
    %cst_19 = arith.constant dense<0.000000e+00> : vector<8xf32>
    %83 = vector.multi_reduction <add>, %82, %cst_19 [1] : vector<8x8xf32> to vector<8xf32>
    %84 = vector.shape_cast %83 : vector<8xf32> to vector<8x1xf32>
    %cst_20 = arith.constant 0.353553385 : f32
    %85 = vector.broadcast %cst_20 : f32 to vector<8x1xf32>
    %86 = arith.mulf %84, %85 : vector<8x1xf32>
    %87 = vector.extract_strided_slice %9 {offsets = [0, 24], sizes = [8, 8], strides = [1, 1]} : vector<8x40xf32> to vector<8x8xf32>
    %cst_21 = arith.constant dense<0.000000e+00> : vector<8xf32>
    %88 = vector.multi_reduction <add>, %87, %cst_21 [1] : vector<8x8xf32> to vector<8xf32>
    %89 = vector.shape_cast %88 : vector<8xf32> to vector<8x1xf32>
    %cst_22 = arith.constant 0.353553385 : f32
    %90 = vector.broadcast %cst_22 : f32 to vector<8x1xf32>
    %91 = arith.mulf %89, %90 : vector<8x1xf32>
    %92 = arith.maximumf %86, %91 : vector<8x1xf32>
    %93 = arith.subf %86, %92 : vector<8x1xf32>
    %94 = math.exp %93 : vector<8x1xf32>
    %95 = arith.subf %91, %92 : vector<8x1xf32>
    %96 = math.exp %95 : vector<8x1xf32>
    %97 = arith.addf %94, %96 : vector<8x1xf32>
    %98 = vector.broadcast %94 : vector<8x1xf32> to vector<8x16xf32>
    %99 = arith.mulf %98, %4 : vector<8x16xf32>
    %100 = vector.broadcast %96 : vector<8x1xf32> to vector<8x16xf32>
    %101 = arith.mulf %100, %5 : vector<8x16xf32>
    %102 = arith.addf %99, %101 : vector<8x16xf32>
    %103 = tpu.reciprocal %97 {approx = true} : vector<8x1xf32> -> vector<8x1xf32>
    %104 = vector.broadcast %103 : vector<8x1xf32> to vector<8x16xf32>
    %105 = arith.mulf %102, %104 : vector<8x16xf32>
    %106 = vector.extract_strided_slice %7 {offsets = [0, 32], sizes = [8, 8], strides = [1, 1]} : vector<8x40xf32> to vector<8x8xf32>
    %cst_23 = arith.constant dense<0.000000e+00> : vector<8xf32>
    %107 = vector.multi_reduction <add>, %106, %cst_23 [1] : vector<8x8xf32> to vector<8xf32>
    %108 = vector.shape_cast %107 : vector<8xf32> to vector<8x1xf32>
    %cst_24 = arith.constant 0.353553385 : f32
    %109 = vector.broadcast %cst_24 : f32 to vector<8x1xf32>
    %110 = arith.mulf %108, %109 : vector<8x1xf32>
    %111 = vector.extract_strided_slice %9 {offsets = [0, 32], sizes = [8, 8], strides = [1, 1]} : vector<8x40xf32> to vector<8x8xf32>
    %cst_25 = arith.constant dense<0.000000e+00> : vector<8xf32>
    %112 = vector.multi_reduction <add>, %111, %cst_25 [1] : vector<8x8xf32> to vector<8xf32>
    %113 = vector.shape_cast %112 : vector<8xf32> to vector<8x1xf32>
    %cst_26 = arith.constant 0.353553385 : f32
    %114 = vector.broadcast %cst_26 : f32 to vector<8x1xf32>
    %115 = arith.mulf %113, %114 : vector<8x1xf32>
    %116 = arith.maximumf %110, %115 : vector<8x1xf32>
    %117 = arith.subf %110, %116 : vector<8x1xf32>
    %118 = math.exp %117 : vector<8x1xf32>
    %119 = arith.subf %115, %116 : vector<8x1xf32>
    %120 = math.exp %119 : vector<8x1xf32>
    %121 = arith.addf %118, %120 : vector<8x1xf32>
    %122 = vector.broadcast %118 : vector<8x1xf32> to vector<8x16xf32>
    %123 = arith.mulf %122, %4 : vector<8x16xf32>
    %124 = vector.broadcast %120 : vector<8x1xf32> to vector<8x16xf32>
    %125 = arith.mulf %124, %5 : vector<8x16xf32>
    %126 = arith.addf %123, %125 : vector<8x16xf32>
    %127 = tpu.reciprocal %121 {approx = true} : vector<8x1xf32> -> vector<8x1xf32>
    %128 = vector.broadcast %127 : vector<8x1xf32> to vector<8x16xf32>
    %129 = arith.mulf %126, %128 : vector<8x16xf32>
    %130 = tpu.concatenate %33, %57, %81, %105, %129 in 1 : vector<8x16xf32>, vector<8x16xf32>, vector<8x16xf32>, vector<8x16xf32>, vector<8x16xf32> -> vector<8x80xf32>
    %c0_27 = arith.constant 0 : index
    %c0_28 = arith.constant 0 : index
    %131 = vector.load %arg4[%c0_27, %c0_28] : memref<8x80xf32, #tpu.memory_space<vmem>>, vector<8x80xf32>
    tpu.vector_store %arg4[%c0_27, %c0_28], %130 {strides = array<i32>} : memref<8x80xf32, #tpu.memory_space<vmem>>, vector<8x80xf32>,
    %cst_29 = arith.constant dense<0.000000e+00> : vector<80xf32>
    %132 = vector.multi_reduction <add>, %130, %cst_29 [0] : vector<8x80xf32> to vector<80xf32>
    %133 = vector.shape_cast %132 : vector<80xf32> to vector<1x80xf32>
    %c0_30 = arith.constant 0 : index
    %c0_31 = arith.constant 0 : index
    %c0_32 = arith.constant 0 : index
    %134 = vector.load %arg5[%c0_30, %c0_31, %c0_32] : memref<1x1x80xf32, #tpu.memory_space<vmem>>, vector<1x1x80xf32>
    %135 = vector.shape_cast %134 : vector<1x1x80xf32> to vector<1x80xf32>
    %136 = vector.shape_cast %133 : vector<1x80xf32> to vector<1x1x80xf32>
    tpu.vector_store %arg5[%c0_30, %c0_31, %c0_32], %136 {strides = array<i32>} : memref<1x1x80xf32, #tpu.memory_space<vmem>>, vector<1x1x80xf32>,
    %137 = arith.mulf %130, %130 : vector<8x80xf32>
    %cst_33 = arith.constant dense<0.000000e+00> : vector<80xf32>
    %138 = vector.multi_reduction <add>, %137, %cst_33 [0] : vector<8x80xf32> to vector<80xf32>
    %139 = vector.shape_cast %138 : vector<80xf32> to vector<1x80xf32>
    %c0_34 = arith.constant 0 : index
    %c0_35 = arith.constant 0 : index
    %c0_36 = arith.constant 0 : index
    %140 = vector.load %arg6[%c0_34, %c0_35, %c0_36] : memref<1x1x80xf32, #tpu.memory_space<vmem>>, vector<1x1x80xf32>
    %141 = vector.shape_cast %140 : vector<1x1x80xf32> to vector<1x80xf32>
    %142 = vector.shape_cast %139 : vector<1x80xf32> to vector<1x1x80xf32>
    tpu.vector_store %arg6[%c0_34, %c0_35, %c0_36], %142 {strides = array<i32>} : memref<1x1x80xf32, #tpu.memory_space<vmem>>, vector<1x1x80xf32>,
    return
  }
  func.func @transform_0(%arg0: i32) -> (i32, i32) {
    %c0_i32 = arith.constant 0 : i32
    %c0_i32_0 = arith.constant 0 : i32
    return %arg0, %c0_i32 : i32, i32
  }
  func.func @transform_1(%arg0: i32) -> (i32, i32) {
    %c0_i32 = arith.constant 0 : i32
    %c0_i32_0 = arith.constant 0 : i32
    %c0_i32_1 = arith.constant 0 : i32
    return %c0_i32, %c0_i32_0 : i32, i32
  }
  func.func @transform_2(%arg0: i32) -> (i32, i32) {
    %c0_i32 = arith.constant 0 : i32
    %c0_i32_0 = arith.constant 0 : i32
    %c0_i32_1 = arith.constant 0 : i32
    return %c0_i32, %c0_i32_0 : i32, i32
  }
  func.func @transform_3(%arg0: i32) -> (i32, i32) {
    %c0_i32 = arith.constant 0 : i32
    %c0_i32_0 = arith.constant 0 : i32
    return %arg0, %c0_i32 : i32, i32
  }
  func.func @transform_4(%arg0: i32) -> (i32, i32, i32) {
    %c0_i32 = arith.constant 0 : i32
    %c0_i32_0 = arith.constant 0 : i32
    %c0_i32_1 = arith.constant 0 : i32
    return %arg0, %c0_i32, %c0_i32_0 : i32, i32, i32
  }
  func.func @transform_5(%arg0: i32) -> (i32, i32, i32) {
    %c0_i32 = arith.constant 0 : i32
    %c0_i32_0 = arith.constant 0 : i32
    %c0_i32_1 = arith.constant 0 : i32
    return %arg0, %c0_i32, %c0_i32_0 : i32, i32, i32
  }
}

module attributes {stable_mosaic.version = 11 : i64} {
  func.func @_lstm_head_kernel(%arg0: i32, %arg1: memref<1x4x128xf32, #tpu.memory_space<vmem>>, %arg2: memref<32x128xf32, #tpu.memory_space<vmem>>, %arg3: memref<32x1xf32, #tpu.memory_space<vmem>>, %arg4: memref<1x1xf32, #tpu.memory_space<vmem>>, %arg5: memref<2x1xf32, #tpu.memory_space<vmem>>, %arg6: memref<1x1x1xf32, #tpu.memory_space<vmem>>, %arg7: memref<1x1x1xf32, #tpu.memory_space<vmem>>) attributes {dimension_semantics = [#tpu.dimension_semantics<parallel>], iteration_bounds = array<i64: 2>, scalar_prefetch = 0 : i64, scratch_operands = 0 : i64, tpu.core_type = #tpu.core_type<tc>, window_params = [{transform_indices = @transform_0, window_bounds = array<i64: 1, 4, 128>}, {pipeline_mode = #tpu.pipeline_mode<synchronous>, transform_indices = @transform_1, window_bounds = array<i64: 32, 128>}, {pipeline_mode = #tpu.pipeline_mode<synchronous>, transform_indices = @transform_2, window_bounds = array<i64: 32, 1>}, {pipeline_mode = #tpu.pipeline_mode<synchronous>, transform_indices = @transform_3, window_bounds = array<i64: 1, 1>}, {pipeline_mode = #tpu.pipeline_mode<synchronous>, transform_indices = @transform_4, window_bounds = array<i64: 2, 1>}, {transform_indices = @transform_5, window_bounds = array<i64: 1, 1, 1>}, {transform_indices = @transform_6, window_bounds = array<i64: 1, 1, 1>}]} {
    %cst = arith.constant 0.000000e+00 : f32
    %0 = vector.broadcast %cst : f32 to vector<1x32xf32>
    %cst_0 = arith.constant 0.000000e+00 : f32
    %1 = vector.broadcast %cst_0 : f32 to vector<1x32xf32>
    %c0_i32 = arith.constant 0 : i32
    %c0 = arith.constant 0 : index
    %2 = arith.index_cast %c0_i32 : i32 to index
    %c0_1 = arith.constant 0 : index
    %3 = vector.load %arg1[%c0, %2, %c0_1] : memref<1x4x128xf32, #tpu.memory_space<vmem>>, vector<1x1x128xf32>
    %4 = vector.shape_cast %3 : vector<1x1x128xf32> to vector<1x128xf32>
    %c0_2 = arith.constant 0 : index
    %c0_3 = arith.constant 0 : index
    %5 = vector.load %arg2[%c0_2, %c0_3] : memref<32x128xf32, #tpu.memory_space<vmem>>, vector<32x128xf32>
    %cst_4 = arith.constant dense<0.000000e+00> : vector<1x128xf32>
    %6 = tpu.matmul %0, %5, %cst_4 {dimension_numbers = #tpu.dot_dimension_numbers<[1], [0], [0], [1], [0, 0, 1, 1], [], []>} : vector<1x32xf32>, vector<32x128xf32>, vector<1x128xf32> -> vector<1x128xf32>
    %7 = arith.addf %4, %6 : vector<1x128xf32>
    %8 = vector.extract_strided_slice %7 {offsets = [0, 0], sizes = [1, 32], strides = [1, 1]} : vector<1x128xf32> to vector<1x32xf32>
    %9 = arith.negf %8 : vector<1x32xf32>
    %10 = math.exp %9 : vector<1x32xf32>
    %cst_5 = arith.constant 1.000000e+00 : f32
    %11 = vector.broadcast %cst_5 : f32 to vector<1x32xf32>
    %12 = arith.addf %11, %10 : vector<1x32xf32>
    %13 = arith.divf %11, %12 : vector<1x32xf32>
    %14 = vector.extract_strided_slice %7 {offsets = [0, 32], sizes = [1, 32], strides = [1, 1]} : vector<1x128xf32> to vector<1x32xf32>
    %15 = arith.negf %14 : vector<1x32xf32>
    %16 = math.exp %15 : vector<1x32xf32>
    %cst_6 = arith.constant 1.000000e+00 : f32
    %17 = vector.broadcast %cst_6 : f32 to vector<1x32xf32>
    %18 = arith.addf %17, %16 : vector<1x32xf32>
    %19 = arith.divf %17, %18 : vector<1x32xf32>
    %20 = vector.extract_strided_slice %7 {offsets = [0, 64], sizes = [1, 32], strides = [1, 1]} : vector<1x128xf32> to vector<1x32xf32>
    %21 = math.tanh %20 : vector<1x32xf32>
    %22 = vector.extract_strided_slice %7 {offsets = [0, 96], sizes = [1, 32], strides = [1, 1]} : vector<1x128xf32> to vector<1x32xf32>
    %23 = arith.negf %22 : vector<1x32xf32>
    %24 = math.exp %23 : vector<1x32xf32>
    %cst_7 = arith.constant 1.000000e+00 : f32
    %25 = vector.broadcast %cst_7 : f32 to vector<1x32xf32>
    %26 = arith.addf %25, %24 : vector<1x32xf32>
    %27 = arith.divf %25, %26 : vector<1x32xf32>
    %28 = arith.mulf %19, %1 : vector<1x32xf32>
    %29 = arith.mulf %13, %21 : vector<1x32xf32>
    %30 = arith.addf %28, %29 : vector<1x32xf32>
    %31 = math.tanh %30 : vector<1x32xf32>
    %32 = arith.mulf %27, %31 : vector<1x32xf32>
    %c1_i32 = arith.constant 1 : i32
    %c0_8 = arith.constant 0 : index
    %33 = arith.index_cast %c1_i32 : i32 to index
    %c0_9 = arith.constant 0 : index
    %34 = vector.load %arg1[%c0_8, %33, %c0_9] : memref<1x4x128xf32, #tpu.memory_space<vmem>>, vector<1x1x128xf32>
    %35 = vector.shape_cast %34 : vector<1x1x128xf32> to vector<1x128xf32>
    %c0_10 = arith.constant 0 : index
    %c0_11 = arith.constant 0 : index
    %36 = vector.load %arg2[%c0_10, %c0_11] : memref<32x128xf32, #tpu.memory_space<vmem>>, vector<32x128xf32>
    %cst_12 = arith.constant dense<0.000000e+00> : vector<1x128xf32>
    %37 = tpu.matmul %32, %36, %cst_12 {dimension_numbers = #tpu.dot_dimension_numbers<[1], [0], [0], [1], [0, 0, 1, 1], [], []>} : vector<1x32xf32>, vector<32x128xf32>, vector<1x128xf32> -> vector<1x128xf32>
    %38 = arith.addf %35, %37 : vector<1x128xf32>
    %39 = vector.extract_strided_slice %38 {offsets = [0, 0], sizes = [1, 32], strides = [1, 1]} : vector<1x128xf32> to vector<1x32xf32>
    %40 = arith.negf %39 : vector<1x32xf32>
    %41 = math.exp %40 : vector<1x32xf32>
    %cst_13 = arith.constant 1.000000e+00 : f32
    %42 = vector.broadcast %cst_13 : f32 to vector<1x32xf32>
    %43 = arith.addf %42, %41 : vector<1x32xf32>
    %44 = arith.divf %42, %43 : vector<1x32xf32>
    %45 = vector.extract_strided_slice %38 {offsets = [0, 32], sizes = [1, 32], strides = [1, 1]} : vector<1x128xf32> to vector<1x32xf32>
    %46 = arith.negf %45 : vector<1x32xf32>
    %47 = math.exp %46 : vector<1x32xf32>
    %cst_14 = arith.constant 1.000000e+00 : f32
    %48 = vector.broadcast %cst_14 : f32 to vector<1x32xf32>
    %49 = arith.addf %48, %47 : vector<1x32xf32>
    %50 = arith.divf %48, %49 : vector<1x32xf32>
    %51 = vector.extract_strided_slice %38 {offsets = [0, 64], sizes = [1, 32], strides = [1, 1]} : vector<1x128xf32> to vector<1x32xf32>
    %52 = math.tanh %51 : vector<1x32xf32>
    %53 = vector.extract_strided_slice %38 {offsets = [0, 96], sizes = [1, 32], strides = [1, 1]} : vector<1x128xf32> to vector<1x32xf32>
    %54 = arith.negf %53 : vector<1x32xf32>
    %55 = math.exp %54 : vector<1x32xf32>
    %cst_15 = arith.constant 1.000000e+00 : f32
    %56 = vector.broadcast %cst_15 : f32 to vector<1x32xf32>
    %57 = arith.addf %56, %55 : vector<1x32xf32>
    %58 = arith.divf %56, %57 : vector<1x32xf32>
    %59 = arith.mulf %50, %30 : vector<1x32xf32>
    %60 = arith.mulf %44, %52 : vector<1x32xf32>
    %61 = arith.addf %59, %60 : vector<1x32xf32>
    %62 = math.tanh %61 : vector<1x32xf32>
    %63 = arith.mulf %58, %62 : vector<1x32xf32>
    %c2_i32 = arith.constant 2 : i32
    %c0_16 = arith.constant 0 : index
    %64 = arith.index_cast %c2_i32 : i32 to index
    %c0_17 = arith.constant 0 : index
    %65 = vector.load %arg1[%c0_16, %64, %c0_17] : memref<1x4x128xf32, #tpu.memory_space<vmem>>, vector<1x1x128xf32>
    %66 = vector.shape_cast %65 : vector<1x1x128xf32> to vector<1x128xf32>
    %c0_18 = arith.constant 0 : index
    %c0_19 = arith.constant 0 : index
    %67 = vector.load %arg2[%c0_18, %c0_19] : memref<32x128xf32, #tpu.memory_space<vmem>>, vector<32x128xf32>
    %cst_20 = arith.constant dense<0.000000e+00> : vector<1x128xf32>
    %68 = tpu.matmul %63, %67, %cst_20 {dimension_numbers = #tpu.dot_dimension_numbers<[1], [0], [0], [1], [0, 0, 1, 1], [], []>} : vector<1x32xf32>, vector<32x128xf32>, vector<1x128xf32> -> vector<1x128xf32>
    %69 = arith.addf %66, %68 : vector<1x128xf32>
    %70 = vector.extract_strided_slice %69 {offsets = [0, 0], sizes = [1, 32], strides = [1, 1]} : vector<1x128xf32> to vector<1x32xf32>
    %71 = arith.negf %70 : vector<1x32xf32>
    %72 = math.exp %71 : vector<1x32xf32>
    %cst_21 = arith.constant 1.000000e+00 : f32
    %73 = vector.broadcast %cst_21 : f32 to vector<1x32xf32>
    %74 = arith.addf %73, %72 : vector<1x32xf32>
    %75 = arith.divf %73, %74 : vector<1x32xf32>
    %76 = vector.extract_strided_slice %69 {offsets = [0, 32], sizes = [1, 32], strides = [1, 1]} : vector<1x128xf32> to vector<1x32xf32>
    %77 = arith.negf %76 : vector<1x32xf32>
    %78 = math.exp %77 : vector<1x32xf32>
    %cst_22 = arith.constant 1.000000e+00 : f32
    %79 = vector.broadcast %cst_22 : f32 to vector<1x32xf32>
    %80 = arith.addf %79, %78 : vector<1x32xf32>
    %81 = arith.divf %79, %80 : vector<1x32xf32>
    %82 = vector.extract_strided_slice %69 {offsets = [0, 64], sizes = [1, 32], strides = [1, 1]} : vector<1x128xf32> to vector<1x32xf32>
    %83 = math.tanh %82 : vector<1x32xf32>
    %84 = vector.extract_strided_slice %69 {offsets = [0, 96], sizes = [1, 32], strides = [1, 1]} : vector<1x128xf32> to vector<1x32xf32>
    %85 = arith.negf %84 : vector<1x32xf32>
    %86 = math.exp %85 : vector<1x32xf32>
    %cst_23 = arith.constant 1.000000e+00 : f32
    %87 = vector.broadcast %cst_23 : f32 to vector<1x32xf32>
    %88 = arith.addf %87, %86 : vector<1x32xf32>
    %89 = arith.divf %87, %88 : vector<1x32xf32>
    %90 = arith.mulf %81, %61 : vector<1x32xf32>
    %91 = arith.mulf %75, %83 : vector<1x32xf32>
    %92 = arith.addf %90, %91 : vector<1x32xf32>
    %93 = math.tanh %92 : vector<1x32xf32>
    %94 = arith.mulf %89, %93 : vector<1x32xf32>
    %c3_i32 = arith.constant 3 : i32
    %c0_24 = arith.constant 0 : index
    %95 = arith.index_cast %c3_i32 : i32 to index
    %c0_25 = arith.constant 0 : index
    %96 = vector.load %arg1[%c0_24, %95, %c0_25] : memref<1x4x128xf32, #tpu.memory_space<vmem>>, vector<1x1x128xf32>
    %97 = vector.shape_cast %96 : vector<1x1x128xf32> to vector<1x128xf32>
    %c0_26 = arith.constant 0 : index
    %c0_27 = arith.constant 0 : index
    %98 = vector.load %arg2[%c0_26, %c0_27] : memref<32x128xf32, #tpu.memory_space<vmem>>, vector<32x128xf32>
    %cst_28 = arith.constant dense<0.000000e+00> : vector<1x128xf32>
    %99 = tpu.matmul %94, %98, %cst_28 {dimension_numbers = #tpu.dot_dimension_numbers<[1], [0], [0], [1], [0, 0, 1, 1], [], []>} : vector<1x32xf32>, vector<32x128xf32>, vector<1x128xf32> -> vector<1x128xf32>
    %100 = arith.addf %97, %99 : vector<1x128xf32>
    %101 = vector.extract_strided_slice %100 {offsets = [0, 0], sizes = [1, 32], strides = [1, 1]} : vector<1x128xf32> to vector<1x32xf32>
    %102 = arith.negf %101 : vector<1x32xf32>
    %103 = math.exp %102 : vector<1x32xf32>
    %cst_29 = arith.constant 1.000000e+00 : f32
    %104 = vector.broadcast %cst_29 : f32 to vector<1x32xf32>
    %105 = arith.addf %104, %103 : vector<1x32xf32>
    %106 = arith.divf %104, %105 : vector<1x32xf32>
    %107 = vector.extract_strided_slice %100 {offsets = [0, 32], sizes = [1, 32], strides = [1, 1]} : vector<1x128xf32> to vector<1x32xf32>
    %108 = arith.negf %107 : vector<1x32xf32>
    %109 = math.exp %108 : vector<1x32xf32>
    %cst_30 = arith.constant 1.000000e+00 : f32
    %110 = vector.broadcast %cst_30 : f32 to vector<1x32xf32>
    %111 = arith.addf %110, %109 : vector<1x32xf32>
    %112 = arith.divf %110, %111 : vector<1x32xf32>
    %113 = vector.extract_strided_slice %100 {offsets = [0, 64], sizes = [1, 32], strides = [1, 1]} : vector<1x128xf32> to vector<1x32xf32>
    %114 = math.tanh %113 : vector<1x32xf32>
    %115 = vector.extract_strided_slice %100 {offsets = [0, 96], sizes = [1, 32], strides = [1, 1]} : vector<1x128xf32> to vector<1x32xf32>
    %116 = arith.negf %115 : vector<1x32xf32>
    %117 = math.exp %116 : vector<1x32xf32>
    %cst_31 = arith.constant 1.000000e+00 : f32
    %118 = vector.broadcast %cst_31 : f32 to vector<1x32xf32>
    %119 = arith.addf %118, %117 : vector<1x32xf32>
    %120 = arith.divf %118, %119 : vector<1x32xf32>
    %121 = arith.mulf %112, %92 : vector<1x32xf32>
    %122 = arith.mulf %106, %114 : vector<1x32xf32>
    %123 = arith.addf %121, %122 : vector<1x32xf32>
    %124 = math.tanh %123 : vector<1x32xf32>
    %125 = arith.mulf %120, %124 : vector<1x32xf32>
    %c4_i32 = arith.constant 4 : i32
    %c0_32 = arith.constant 0 : index
    %c0_33 = arith.constant 0 : index
    %126 = vector.load %arg3[%c0_32, %c0_33] : memref<32x1xf32, #tpu.memory_space<vmem>>, vector<32x1xf32>
    %cst_34 = arith.constant dense<0.000000e+00> : vector<1x1xf32>
    %127 = tpu.matmul %125, %126, %cst_34 {dimension_numbers = #tpu.dot_dimension_numbers<[1], [0], [0], [1], [0, 0, 1, 1], [], []>} : vector<1x32xf32>, vector<32x1xf32>, vector<1x1xf32> -> vector<1x1xf32>
    %c0_35 = arith.constant 0 : index
    %c0_36 = arith.constant 0 : index
    %128 = vector.load %arg4[%c0_35, %c0_36] : memref<1x1xf32, #tpu.memory_space<vmem>>, vector<1x1xf32>
    %129 = arith.addf %127, %128 : vector<1x1xf32>
    %130 = arith.index_cast %arg0 : i32 to index
    %c0_37 = arith.constant 0 : index
    %131 = vector.load %arg5[%130, %c0_37] : memref<2x1xf32, #tpu.memory_space<vmem>>, vector<1x1xf32>
    %cst_38 = arith.constant 0.000000e+00 : f32
    %132 = vector.broadcast %cst_38 : f32 to vector<1x1xf32>
    %133 = arith.maximumf %129, %132 : vector<1x1xf32>
    %134 = arith.mulf %129, %131 : vector<1x1xf32>
    %135 = arith.subf %133, %134 : vector<1x1xf32>
    %136 = math.absf %129 : vector<1x1xf32>
    %cst_39 = arith.constant 0.000000e+00 : f32
    %137 = vector.broadcast %cst_39 : f32 to vector<1x1xf32>
    %138 = arith.subf %137, %136 : vector<1x1xf32>
    %139 = math.exp %138 : vector<1x1xf32>
    %140 = math.log1p %139 : vector<1x1xf32>
    %141 = arith.addf %135, %140 : vector<1x1xf32>
    %c0_40 = arith.constant 0 : index
    %c0_41 = arith.constant 0 : index
    %c0_42 = arith.constant 0 : index
    %142 = vector.load %arg6[%c0_40, %c0_41, %c0_42] : memref<1x1x1xf32, #tpu.memory_space<vmem>>, vector<1x1x1xf32>
    %143 = vector.shape_cast %142 : vector<1x1x1xf32> to vector<1x1xf32>
    %144 = vector.shape_cast %141 : vector<1x1xf32> to vector<1x1x1xf32>
    tpu.vector_store %arg6[%c0_40, %c0_41, %c0_42], %144 {strides = array<i32>} : memref<1x1x1xf32, #tpu.memory_space<vmem>>, vector<1x1x1xf32>,
    %145 = arith.negf %129 : vector<1x1xf32>
    %146 = math.exp %145 : vector<1x1xf32>
    %cst_43 = arith.constant 1.000000e+00 : f32
    %147 = vector.broadcast %cst_43 : f32 to vector<1x1xf32>
    %148 = arith.addf %147, %146 : vector<1x1xf32>
    %149 = arith.divf %147, %148 : vector<1x1xf32>
    %c0_44 = arith.constant 0 : index
    %c0_45 = arith.constant 0 : index
    %c0_46 = arith.constant 0 : index
    %150 = vector.load %arg7[%c0_44, %c0_45, %c0_46] : memref<1x1x1xf32, #tpu.memory_space<vmem>>, vector<1x1x1xf32>
    %151 = vector.shape_cast %150 : vector<1x1x1xf32> to vector<1x1xf32>
    %152 = vector.shape_cast %149 : vector<1x1xf32> to vector<1x1x1xf32>
    tpu.vector_store %arg7[%c0_44, %c0_45, %c0_46], %152 {strides = array<i32>} : memref<1x1x1xf32, #tpu.memory_space<vmem>>, vector<1x1x1xf32>,
    return
  }
  func.func @transform_0(%arg0: i32) -> (i32, i32, i32) {
    %c0_i32 = arith.constant 0 : i32
    %c0_i32_0 = arith.constant 0 : i32
    %c0_i32_1 = arith.constant 0 : i32
    return %arg0, %c0_i32, %c0_i32_0 : i32, i32, i32
  }
  func.func @transform_1(%arg0: i32) -> (i32, i32) {
    %c0_i32 = arith.constant 0 : i32
    %c0_i32_0 = arith.constant 0 : i32
    %c0_i32_1 = arith.constant 0 : i32
    return %c0_i32, %c0_i32_0 : i32, i32
  }
  func.func @transform_2(%arg0: i32) -> (i32, i32) {
    %c0_i32 = arith.constant 0 : i32
    %c0_i32_0 = arith.constant 0 : i32
    %c0_i32_1 = arith.constant 0 : i32
    return %c0_i32, %c0_i32_0 : i32, i32
  }
  func.func @transform_3(%arg0: i32) -> (i32, i32) {
    %c0_i32 = arith.constant 0 : i32
    %c0_i32_0 = arith.constant 0 : i32
    %c0_i32_1 = arith.constant 0 : i32
    return %c0_i32, %c0_i32_0 : i32, i32
  }
  func.func @transform_4(%arg0: i32) -> (i32, i32) {
    %c0_i32 = arith.constant 0 : i32
    %c0_i32_0 = arith.constant 0 : i32
    %c0_i32_1 = arith.constant 0 : i32
    return %c0_i32, %c0_i32_0 : i32, i32
  }
  func.func @transform_5(%arg0: i32) -> (i32, i32, i32) {
    %c0_i32 = arith.constant 0 : i32
    %c0_i32_0 = arith.constant 0 : i32
    %c0_i32_1 = arith.constant 0 : i32
    return %arg0, %c0_i32, %c0_i32_0 : i32, i32, i32
  }
  func.func @transform_6(%arg0: i32) -> (i32, i32, i32) {
    %c0_i32 = arith.constant 0 : i32
    %c0_i32_0 = arith.constant 0 : i32
    %c0_i32_1 = arith.constant 0 : i32
    return %arg0, %c0_i32, %c0_i32_0 : i32, i32, i32
  }
}

module attributes {stable_mosaic.version = 11 : i64} {
  func.func @_gates_kernel(%arg0: i32, %arg1: memref<8x80xf32, #tpu.memory_space<vmem>>, %arg2: memref<80x128xf32, #tpu.memory_space<vmem>>, %arg3: memref<1x128xf32, #tpu.memory_space<vmem>>, %arg4: memref<8x128xf32, #tpu.memory_space<vmem>>) attributes {dimension_semantics = [#tpu.dimension_semantics<parallel>], iteration_bounds = array<i64: 1>, scalar_prefetch = 0 : i64, scratch_operands = 0 : i64, tpu.core_type = #tpu.core_type<tc>, window_params = [{transform_indices = @transform_0, window_bounds = array<i64: 8, 80>}, {pipeline_mode = #tpu.pipeline_mode<synchronous>, transform_indices = @transform_1, window_bounds = array<i64: 80, 128>}, {pipeline_mode = #tpu.pipeline_mode<synchronous>, transform_indices = @transform_2, window_bounds = array<i64: 1, 128>}, {transform_indices = @transform_3, window_bounds = array<i64: 8, 128>}]} {
    %c0 = arith.constant 0 : index
    %c0_0 = arith.constant 0 : index
    %0 = vector.load %arg1[%c0, %c0_0] : memref<8x80xf32, #tpu.memory_space<vmem>>, vector<8x80xf32>
    %c0_1 = arith.constant 0 : index
    %c0_2 = arith.constant 0 : index
    %1 = vector.load %arg2[%c0_1, %c0_2] : memref<80x128xf32, #tpu.memory_space<vmem>>, vector<80x128xf32>
    %cst = arith.constant dense<0.000000e+00> : vector<8x128xf32>
    %2 = tpu.matmul %0, %1, %cst {dimension_numbers = #tpu.dot_dimension_numbers<[1], [0], [0], [1], [0, 0, 1, 1], [], []>} : vector<8x80xf32>, vector<80x128xf32>, vector<8x128xf32> -> vector<8x128xf32>
    %c0_3 = arith.constant 0 : index
    %c0_4 = arith.constant 0 : index
    %3 = vector.load %arg3[%c0_3, %c0_4] : memref<1x128xf32, #tpu.memory_space<vmem>>, vector<1x128xf32>
    %4 = vector.broadcast %3 : vector<1x128xf32> to vector<8x128xf32>
    %5 = arith.addf %2, %4 : vector<8x128xf32>
    %c0_5 = arith.constant 0 : index
    %c0_6 = arith.constant 0 : index
    %6 = vector.load %arg4[%c0_5, %c0_6] : memref<8x128xf32, #tpu.memory_space<vmem>>, vector<8x128xf32>
    tpu.vector_store %arg4[%c0_5, %c0_6], %5 {strides = array<i32>} : memref<8x128xf32, #tpu.memory_space<vmem>>, vector<8x128xf32>,
    return
  }
  func.func @transform_0(%arg0: i32) -> (i32, i32) {
    %c0_i32 = arith.constant 0 : i32
    %c0_i32_0 = arith.constant 0 : i32
    return %arg0, %c0_i32 : i32, i32
  }
  func.func @transform_1(%arg0: i32) -> (i32, i32) {
    %c0_i32 = arith.constant 0 : i32
    %c0_i32_0 = arith.constant 0 : i32
    %c0_i32_1 = arith.constant 0 : i32
    return %c0_i32, %c0_i32_0 : i32, i32
  }
  func.func @transform_2(%arg0: i32) -> (i32, i32) {
    %c0_i32 = arith.constant 0 : i32
    %c0_i32_0 = arith.constant 0 : i32
    %c0_i32_1 = arith.constant 0 : i32
    return %c0_i32, %c0_i32_0 : i32, i32
  }
  func.func @transform_3(%arg0: i32) -> (i32, i32) {
    %c0_i32 = arith.constant 0 : i32
    %c0_i32_0 = arith.constant 0 : i32
    return %arg0, %c0_i32 : i32, i32
  }
}

</mosaic_0001>

<bundles_post_ra>
// kernel: model_forward.4
= control target key start
LH: loop header
LB: loop body
LE: loop exit
PB: predicated region body
PF: predicated region fallthrough
CT: control target
= control target key end

     0   :  { %v149_v0 = vmov 0.0   ;;  %vm150_vm0 = vmmov 0   ;;  %vm32_vm1 = vcmask 654336   ;;  %s210_s1 = inlined_call_operand.vmem [shape: f32[80,128], index: 1, kind: input, shape index: {}]   ;;  %s211_s0 = inlined_call_operand.vmem [shape: f32[8,80], index: 0, kind: input, shape index: {}]   ;;  %s212_s2 = inlined_call_operand.vmem [shape: f32[1,128], index: 2, kind: input, shape index: {}]   ;;  %s213_s3 = inlined_call_operand.vmem [shape: f32[8,128], index: 3, kind: output, shape index: {}]  }
   0x1   :  { %124 = vmatprep.subr.mxu0 %v149_v0  ;;  %v24_v1 = vld [vmem:[%s210_s1 + $0x48] sm:$0xff]  ;;  %v23_v2 = vld [vmem:[%s210_s1 + $0x40] sm:$0xff]  ;;  %144 = vmatprep.mubr.msk.f32.mxu0 %vm150_vm0, %v149_v0  ;;  %v22_v3 = vld [vmem:[%s210_s1 + $0x38] sm:$0xff] }
   0x2   :  { %125 = vmatpush3.msra.mxu0 %v24_v1  ;;  %v21_v4 = vld [vmem:[%s210_s1 + $0x30] sm:$0xff]  ;;  %v20_v5 = vld [vmem:[%s210_s1 + $0x28] sm:$0xff]  ;;  %v19_v6 = vld [vmem:[%s210_s1 + $0x20] sm:$0xff] }
   0x3   :  { %126 = vmatprep.subr.mxu0 %v149_v0  ;;  %v18_v7 = vld [vmem:[%s210_s1 + $0x18] sm:$0xff]  ;;  %v17_v8 = vld [vmem:[%s210_s1 + $0x10] sm:$0xff]  ;;  %v16_v9 = vld [vmem:[%s210_s1 + $0x8] sm:$0xff] }
   0x4   :  { %127 = vmatpush3.msra.mxu0 %v23_v2  ;;  %v15_v10 = vld [vmem:[%s210_s1] sm:$0xff] }
   0x5   :  { %128 = vmatprep.subr.mxu0 %v149_v0  ;;  %v14_v11 = vld [vmem:[%s211_s0] sm:$0xff] }
   0x6   :  { %129 = vmatpush3.msra.mxu0 %v22_v3  ;;  %v111_v12 = vld [vmem:[%s212_s2] ss:$0 sm:$0xff] }
   0x7   :  { %130 = vmatprep.subr.mxu0 %v149_v0 }
   0x8   :  { %131 = vmatpush3.msra.mxu0 %v21_v4 }
   0x9   :  { %132 = vmatprep.subr.mxu0 %v149_v0 }
   0xa   :  { %133 = vmatpush3.msra.mxu0 %v20_v5 }
   0xb   :  { %134 = vmatprep.subr.mxu0 %v149_v0 }
   0xc   :  { %135 = vmatpush3.msra.mxu0 %v19_v6 }
   0xd   :  { %136 = vmatprep.subr.mxu0 %v149_v0 }
   0xe   :  { %137 = vmatpush3.msra.mxu0 %v18_v7 }
   0xf   :  { %138 = vmatprep.subr.mxu0 %v149_v0 }
  0x10   :  { %139 = vmatpush3.msra.mxu0 %v17_v8 }
  0x11   :  { %140 = vmatprep.subr.mxu0 %v149_v0 }
  0x12   :  { %141 = vmatpush3.msra.mxu0 %v16_v9 }
  0x13   :  { %142 = vmatprep.subr.mxu0 %v149_v0 }
  0x14   :  { %143 = vmatpush3.msra.mxu0 %v15_v10 }
  0x15   :  { %145 = vmatmul.mubr.msk.f32.vlgmr.msra.gmra.mxu0 %vm32_vm1, %v14_v11 }
  0xd5   :  { %v102_v13 = vpop.f32.mrf.mxu0 }
  0xd6   :  { %v103_v14 = vadd.f32 %v111_v12, %v102_v13 }
  0xd7   :  { %v146_v15 = vpop.f32.mrf.mxu0 }
  0xd8   :  { %106 = vst [vmem:[%s213_s3] sm:$0xff] %v103_v14 }

// kernel: model_forward.5
= control target key start
LH: loop header
LB: loop body
LE: loop exit
PB: predicated region body
PF: predicated region fallthrough
CT: control target
= control target key end

     0   :  { %s1043_s23 = smov 0   ;;  %s1177_s0 = inlined_call_operand.vmem [shape: f32[2,4,128], index: 0, kind: input, shape index: {}]   ;;  %s1178_s1 = inlined_call_operand.vmem [shape: f32[32,128], index: 1, kind: input, shape index: {}]   ;;  %s1179_s2 = inlined_call_operand.vmem [shape: f32[32,1], index: 2, kind: input, shape index: {}]   ;;  %s1180_s3 = inlined_call_operand.<no memory space> [shape: f32[1,1], index: 3, kind: input, shape index: {}]   ;;  %s1181_s4 = inlined_call_operand.vmem [shape: f32[2,1], index: 4, kind: input, shape index: {}]   ;;  %s1182_s5 = inlined_call_operand.vmem [shape: f32[2,1,1], index: 5, kind: output, shape index: {0}]   ;;  %s1183_s6 = inlined_call_operand.vmem [shape: f32[2,1,1], index: 6, kind: output, shape index: {1}]  }
   0x1   :  { %v12_v0 = vstv %s1180_s3 }
   0x2   :  { %13 = vst [vmem:[#allocation2] sm:$0x1] %v12_v0 }
   0x3 LB: > { %s1049_s24 = sadd.s32 4294967295, %s999_s23   ;;  %p848_p0 = scmp.ge.s32.totalorder %s999_s23, 1  ;;  %s999_s23 = sphi %s1043_s23, %s19_s23  }
   0x4   : > { %p216_p1 = scmp.lt.s32.totalorder %s999_s23, 3 }
   0x6   : > { %p217_p2 = pnand %p848_p0, %p216_p1 }
   0x7   : > { %p246_p3 = scmp.lt.s32.totalorder (!%p217_p2), %s1049_s24, 1  ;;  %s1003_s13 = smov (!%p217_p2), 64  }
   0x8   : > { %220 = sbr.rel (%p217_p2) target bundleno = 3015 (0xbc7), region = 40  ;;  %s1004_s14 = smov (!%p217_p2), 32  }
   0x9   : > { %s743_s3 = scalar_lea.vmem (!%p217_p2), %s1181_s4, %s1049_s24 }
   0xd   : > { %v1056_v1 = vld [vmem:[%s1178_s1 + $0x18] sm:$0xff]  ;;  %v1001_v2 = vmov 0.0   ;;  %v1062_v3 = vld [vmem:[%s1178_s1 + $0x10] sm:$0xff]  ;;  %vm1002_vm0 = vmmov 0   ;;  %v1072_v4 = vld [vmem:[%s1178_s1 + $0x8] sm:$0xff]  ;;  %s1103_s8 = scalar_select %p246_p3, %s1049_s24, 1 }
   0xe   : > { %886 = vmatprep.subr.mxu0 %v1001_v2  ;;  %894 = vmatprep.mubr.msk.f32.mxu0 %vm1002_vm0, %v1001_v2  ;;  %v257_v5 = vld [vmem:[%s1178_s1] sm:$0xff]  ;;  %vm261_vm1 = vcmask 261120   ;;  %vm762_vm2 = vcmask 0  }
   0xf   : > { %887 = vmatpush3.msra.mxu0 %v1056_v1  ;;  %897 = vmatprep.subr.mxu1 %v1001_v2  ;;  %s849_s9 = sshll.u32 %s1103_s8, 2  ;;  %s255_s29 = scalar_lea.vmem %s1183_s6, %s1103_s8 }
  0x10   : > { %888 = vmatprep.subr.mxu0 %v1001_v2  ;;  %898 = vmatpush3.msra.mxu1 %v1056_v1  ;;  %s1109_s12 = scalar_lea.vmem %s1177_s0, %s849_s9  ;;  %s252_s7 = scalar_lea.vmem %s1182_s5, %s1103_s8 }
  0x11   : > { %889 = vmatpush3.msra.mxu0 %v1062_v3  ;;  %899 = vmatprep.subr.mxu1 %v1001_v2  ;;  %v256_v6 = vld [vmem:[%s1109_s12] sm:$0x1]  ;;  %v360_v24 = vld [vmem:[%s1109_s12 + $0x1] sm:$0x1]  ;;  %v461_v42 = vld [vmem:[%s1109_s12 + $0x2] sm:$0x1] }
  0x12   : > { %890 = vmatprep.subr.mxu0 %v1001_v2  ;;  %900 = vmatpush3.msra.mxu1 %v1062_v3  ;;  %v562_v60 = vld [vmem:[%s1109_s12 + $0x3] sm:$0x1] }
  0x13   : > { %891 = vmatpush3.msra.mxu0 %v1072_v4  ;;  %901 = vmatprep.subr.mxu1 %v1001_v2 }
  0x14   : > { %892 = vmatprep.subr.mxu0 %v1001_v2  ;;  %902 = vmatpush3.msra.mxu1 %v1072_v4 }
  0x15   : > { %893 = vmatpush3.msra.mxu0 %v257_v5  ;;  %903 = vmatprep.subr.mxu1 %v1001_v2 }
  0x16   : > { %895 = vmatmul.mubr.f32.vlgmr.msra.gmra.mxu0 %v1001_v2  ;;  %904 = vmatpush3.msra.mxu1 %v257_v5 }
  0x17   : > { %905 = vmatprep.mubr.msk.f32.mxu1 %vm1002_vm0, %v1001_v2  ;;  %908 = vmatprep.subr.mxu0 %v1001_v2 }
  0x18   : > { %909 = vmatpush3.msra.mxu0 %v1056_v1  ;;  %916 = vmatprep.mubr.msk.f32.mxu0 %vm1002_vm0, %v1001_v2 }
  0x19   : > { %910 = vmatprep.subr.mxu0 %v1001_v2  ;;  %919 = vmatprep.subr.mxu1 %v1001_v2 }
  0x1a   : > { %911 = vmatpush3.msra.mxu0 %v1062_v3 }
  0x1b   : > { %912 = vmatprep.subr.mxu0 %v1001_v2 }
  0x1c   : > { %913 = vmatpush3.msra.mxu0 %v1072_v4 }
  0x1d   : > { %914 = vmatprep.subr.mxu0 %v1001_v2 }
  0x1e   : > { %915 = vmatpush3.msra.mxu0 %v257_v5 }
  0x1f   : > { %930 = vmatprep.subr.mxu0 %v1001_v2 }
  0xd6   : > { %v331_v7 = vpop.f32.mrf.mxu0 }
  0xd7   : > { %v335_v8 = vadd.f32 %v331_v7, %v256_v6 }
  0xd8   : > { %v896_v9 = vpop.f32.mrf.mxu0 }
  0xd9   : > { %953 = vtanh.f32 %v335_v8  ;;  %v850_v11 = vmul.f32 -1.442695, %v335_v8 }
  0xdb   : > { %955 = vpow2.f32 %v850_v11  ;;  %v666_v11 = vld [vmem:[%s1179_s2 + $0x18] sm:$0xff] }
  0xe6   : > { %v954_v10 = vpop.eup %953 }
  0xe7   : > { %345 = vrot.lane.b32.xlu0 %v954_v10, %s1003_s13 }
  0xe8   : > { %v956_v12 = vpop.eup %955 }
  0xe9   : > { %v339_v13 = vadd.f32 1.0, %v956_v12  ;;  %v665_v12 = vld [vmem:[%s1179_s2 + $0x10] sm:$0xff] }
  0xeb   : > { %957 = vrcp.f32 %v339_v13  ;;  %v664_v13 = vld [vmem:[%s1179_s2 + $0x8] sm:$0xff] }
  0xf8   : > { %v958_v14 = vpop.eup %957 }
  0xf9   : > { %v343_v17 = vmul.f32 0.0, %v958_v14 }
 0x159   : > { %v346_v15 = vpop.permute.xlu0 %345 }
 0x15a   : > { %v348_v16 = vmul.f32 %v958_v14, %v346_v15 }
 0x15c   : > { %350 = vrot.lane.b32.xlu0 %v348_v16, %s1004_s14 }
 0x1ce   : > { %v351_v18 = vpop.permute.xlu0 %350 }
 0x1cf   : > { %v353_v19 = vadd.f32 %v351_v18, %v343_v17 }
 0x1d1   : > { %959 = vtanh.f32 %v353_v19 }
 0x1de   : > { %v960_v20 = vpop.eup %959 }
 0x1df   : > { %356 = vrot.lane.b32.xlu1 %v960_v20, %s1003_s13 }
 0x251   : > { %v357_v21 = vpop.permute.xlu1 %356 }
 0x252   : > { %v359_v22 = vmul.f32 %v958_v14, %v357_v21  ;;  %v663_v14 = vld [vmem:[%s1179_s2] sm:$0xff] }
 0x254   : > { %362 = vrot.lane.b32.xlu1 %v359_v22, %s1004_s14 }
 0x2c6   : > { %v363_v23 = vpop.permute.xlu1 %362 }
 0x2c7   : > { %906 = vmatmul.mubr.msk.f32.vlgmr.msra.gmra.mxu1 %vm261_vm1, %v363_v23 }
 0x2c8   : > { %920 = vmatpush3.msra.mxu1 %v1056_v1  ;;  %927 = vmatprep.mubr.msk.f32.mxu1 %vm1002_vm0, %v1001_v2 }
 0x2c9   : > { %921 = vmatprep.subr.mxu1 %v1001_v2 }
 0x2ca   : > { %922 = vmatpush3.msra.mxu1 %v1062_v3 }
 0x2cb   : > { %923 = vmatprep.subr.mxu1 %v1001_v2 }
 0x2cc   : > { %924 = vmatpush3.msra.mxu1 %v1072_v4 }
 0x2cd   : > { %925 = vmatprep.subr.mxu1 %v1001_v2 }
 0x2ce   : > { %926 = vmatpush3.msra.mxu1 %v257_v5 }
 0x387   : > { %v432_v25 = vpop.f32.mrf.mxu1 }
 0x388   : > { %v436_v26 = vadd.f32 %v432_v25, %v360_v24 }
 0x389   : > { %v907_v27 = vpop.f32.mrf.mxu1 }
 0x38a   : > { %961 = vtanh.f32 %v436_v26  ;;  %v852_v29 = vmul.f32 -1.442695, %v436_v26 }
 0x38c   : > { %963 = vpow2.f32 %v852_v29 }
 0x397   : > { %v962_v28 = vpop.eup %961 }
 0x398   : > { %446 = vrot.lane.b32.xlu0 %v962_v28, %s1003_s13 }
 0x399   : > { %v964_v30 = vpop.eup %963 }
 0x39a   : > { %v440_v31 = vadd.f32 1.0, %v964_v30 }
 0x39c   : > { %965 = vrcp.f32 %v440_v31  ;;  %v744_v31 = vld [vmem:[%s743_s3] sm:$0x1] }
 0x3a9   : > { %v966_v32 = vpop.eup %965 }
 0x3aa   : > { %v444_v35 = vmul.f32 %v966_v32, %v353_v19  ;;  %v667_v19 = vld [vmem:[#allocation2] sm:$0x1] }
 0x40a   : > { %v447_v33 = vpop.permute.xlu0 %446 }
 0x40b   : > { %v449_v34 = vmul.f32 %v966_v32, %v447_v33 }
 0x40d   : > { %451 = vrot.lane.b32.xlu1 %v449_v34, %s1004_s14 }
 0x47f   : > { %v452_v36 = vpop.permute.xlu1 %451 }
 0x480   : > { %v454_v37 = vadd.f32 %v452_v36, %v444_v35 }
 0x482   : > { %967 = vtanh.f32 %v454_v37 }
 0x48f   : > { %v968_v38 = vpop.eup %967 }
 0x490   : > { %457 = vrot.lane.b32.xlu0 %v968_v38, %s1003_s13 }
 0x502   : > { %v458_v39 = vpop.permute.xlu0 %457 }
 0x503   : > { %v460_v40 = vmul.f32 %v966_v32, %v458_v39 }
 0x505   : > { %463 = vrot.lane.b32.xlu1 %v460_v40, %s1004_s14 }
 0x577   : > { %v464_v41 = vpop.permute.xlu1 %463 }
 0x578   : > { %917 = vmatmul.mubr.msk.f32.vlgmr.msra.gmra.mxu0 %vm261_vm1, %v464_v41 }
 0x579   : > { %938 = vmatprep.mubr.msk.f32.mxu0 %vm1002_vm0, %v1001_v2  ;;  %931 = vmatpush3.msra.mxu0 %v666_v11 }
 0x57a   : > { %932 = vmatprep.subr.mxu0 %v1001_v2 }
 0x57b   : > { %933 = vmatpush3.msra.mxu0 %v665_v12 }
 0x57c   : > { %934 = vmatprep.subr.mxu0 %v1001_v2 }
 0x57d   : > { %935 = vmatpush3.msra.mxu0 %v664_v13 }
 0x57e   : > { %936 = vmatprep.subr.mxu0 %v1001_v2 }
 0x57f   : > { %937 = vmatpush3.msra.mxu0 %v663_v14 }
 0x638   : > { %v533_v43 = vpop.f32.mrf.mxu0 }
 0x639   : > { %v537_v44 = vadd.f32 %v533_v43, %v461_v42 }
 0x63a   : > { %v918_v45 = vpop.f32.mrf.mxu0 }
 0x63b   : > { %969 = vtanh.f32 %v537_v44  ;;  %v854_v47 = vmul.f32 -1.442695, %v537_v44 }
 0x63d   : > { %971 = vpow2.f32 %v854_v47 }
 0x648   : > { %v970_v46 = vpop.eup %969 }
 0x649   : > { %547 = vrot.lane.b32.xlu0 %v970_v46, %s1003_s13 }
 0x64a   : > { %v972_v48 = vpop.eup %971 }
 0x64b   : > { %v541_v49 = vadd.f32 1.0, %v972_v48 }
 0x64d   : > { %973 = vrcp.f32 %v541_v49 }
 0x65a   : > { %v974_v50 = vpop.eup %973 }
 0x65b   : > { %v545_v53 = vmul.f32 %v974_v50, %v454_v37 }
 0x6bb   : > { %v548_v51 = vpop.permute.xlu0 %547 }
 0x6bc   : > { %v550_v52 = vmul.f32 %v974_v50, %v548_v51 }
 0x6be   : > { %552 = vrot.lane.b32.xlu1 %v550_v52, %s1004_s14 }
 0x730   : > { %v553_v54 = vpop.permute.xlu1 %552 }
 0x731   : > { %v555_v55 = vadd.f32 %v553_v54, %v545_v53 }
 0x733   : > { %975 = vtanh.f32 %v555_v55 }
 0x740   : > { %v976_v56 = vpop.eup %975 }
 0x741   : > { %558 = vrot.lane.b32.xlu0 %v976_v56, %s1003_s13 }
 0x7b3   : > { %v559_v57 = vpop.permute.xlu0 %558 }
 0x7b4   : > { %v561_v58 = vmul.f32 %v974_v50, %v559_v57 }
 0x7b6   : > { %564 = vrot.lane.b32.xlu1 %v561_v58, %s1004_s14 }
 0x828   : > { %v565_v59 = vpop.permute.xlu1 %564 }
 0x829   : > { %928 = vmatmul.mubr.msk.f32.vlgmr.msra.gmra.mxu1 %vm261_vm1, %v565_v59 }
 0x8e9   : > { %v634_v61 = vpop.f32.mrf.mxu1 }
 0x8ea   : > { %v638_v62 = vadd.f32 %v634_v61, %v562_v60 }
 0x8eb   : > { %v929_v63 = vpop.f32.mrf.mxu1 }
 0x8ec   : > { %977 = vtanh.f32 %v638_v62  ;;  %v856_v1 = vmul.f32 -1.442695, %v638_v62 }
 0x8ee   : > { %979 = vpow2.f32 %v856_v1 }
 0x8f9   : > { %v978_v0 = vpop.eup %977 }
 0x8fa   : > { %648 = vrot.lane.b32.xlu0 %v978_v0, %s1003_s13 }
 0x8fb   : > { %v980_v3 = vpop.eup %979 }
 0x8fc   : > { %v642_v4 = vadd.f32 1.0, %v980_v3 }
 0x8fe   : > { %981 = vrcp.f32 %v642_v4 }
 0x90b   : > { %v982_v5 = vpop.eup %981 }
 0x90c   : > { %v646_v8 = vmul.f32 %v982_v5, %v555_v55 }
 0x96c   : > { %v649_v6 = vpop.permute.xlu0 %648 }
 0x96d   : > { %v651_v7 = vmul.f32 %v982_v5, %v649_v6 }
 0x96f   : > { %653 = vrot.lane.b32.xlu1 %v651_v7, %s1004_s14 }
 0x9e1   : > { %v654_v9 = vpop.permute.xlu1 %653 }
 0x9e2   : > { %v656_v10 = vadd.f32 %v654_v9, %v646_v8 }
 0x9e4   : > { %983 = vtanh.f32 %v656_v10 }
 0x9f1   : > { %v984_v15 = vpop.eup %983 }
 0x9f2   : > { %659 = vrot.lane.b32.xlu0 %v984_v15, %s1003_s13 }
 0xa64   : > { %v660_v16 = vpop.permute.xlu0 %659 }
 0xa65   : > { %v662_v17 = vmul.f32 %v982_v5, %v660_v16 }
 0xa67   : > { %669 = vrot.lane.b32.xlu1 %v662_v17, %s1004_s14 }
 0xad9   : > { %v670_v18 = vpop.permute.xlu1 %669 }
 0xada   : > { %939 = vmatmul.mubr.msk.f32.vlgmr.msra.gmra.mxu0 %vm261_vm1, %v670_v18 }
 0xb9a   : > { %v739_v20 = vpop.f32.mrf.mxu0 }
 0xb9b   : > { %v740_v21 = vadd.f32 %v739_v20, %v667_v19 }
 0xb9c   : > { %v940_v22 = vpop.f32.mrf.mxu0 }
 0xb9d   : > { %v748_v23 = vand.u32 2147483647, %v740_v21  ;;  %v858_v24 = vmul.f32 -1.442695, %v740_v21  ;;  %v745_v34 = vmax.f32 %v740_v21, 0.0  ;;  %v746_v35 = vmul.f32 %v744_v31, %v740_v21 }
 0xb9f   : > { %v749_v2 = vsub.f32 0.0, %v748_v23  ;;  %985 = vpow2.f32 %v858_v24  ;;  %v747_v40 = vsub.f32 %v745_v34, %v746_v35 }
 0xba1   : > { %v750_v25 = vmul.f32 1.442695, %v749_v2 }
 0xba3   : > { %987 = vpow2.f32 %v750_v25 }
 0xbac   : > { %v986_v26 = vpop.eup %985 }
 0xbad   : > { %v767_v27 = vadd.f32 1.0, %v986_v26 }
 0xbaf   : > { %989 = vrcp.f32 %v767_v27 }
 0xbb0   : > { %v988_v28 = vpop.eup %987 }
 0xbb1   : > { %v752_v29 = vadd.f32 1.0, %v988_v28  ;;  %v755_v30 = vmul.f32 -0.5, %v988_v28  ;;  %v758_v36 = vand.u32 2147483647, %v988_v28 }
 0xbb3   : > { %991 = vlog2.f32 %v752_v29  ;;  %v756_v33 = vadd.f32 1.0, %v755_v30  ;;  %vm759_vm3 = vcmp.lt.f32.partialorder %v758_v36, 0.0004427343 }
 0xbb5   : > { %v757_v39 = vmul.f32 %v988_v28, %v756_v33 }
 0xbbc   : > { %v990_v32 = vpop.eup %989 }
 0xbbd   : > { %770 = vst.msk [vmem:[%s255_s29] sm:$0x1] %vm762_vm2, %v990_v32 }
 0xbc0   : > { %v992_v37 = vpop.eup %991 }
 0xbc1   : > { %v754_v38 = vmul.f32 0.6931472, %v992_v37 }
 0xbc3   : > { %v760_v41 = vsel %vm759_vm3, %v757_v39, %v754_v38 }
 0xbc4   : > { %v761_v42 = vadd.f32 %v760_v41, %v747_v40 }
 0xbc6   : > { %763 = vst.msk [vmem:[%s252_s7] sm:$0x1] %vm762_vm2, %v761_v42 }
 0xbc7 PF: > { %s19_s23 = sadd.s32 1, %s999_s23  }
 0xbc8   : > { %p16_p4 = scmp.ge.s32.totalorder %s19_s23, 4  }
 0xbca   :  { %18 = sbr.rel (!%p16_p4) target bundleno = 3 (0x3), region = 83 }

// kernel: model_forward.3
= control target key start
LH: loop header
LB: loop body
LE: loop exit
PB: predicated region body
PF: predicated region fallthrough
CT: control target
= control target key end

     0   :  { %11 = vsyncpa [#allocation3], 0  ;;  %s572_s18 = smov [#allocation2]   ;;  %s677_s0 = inlined_call_operand.vmem [shape: f32[8,32], index: 0, kind: input, shape index: {}]   ;;  %s678_s1 = inlined_call_operand.hbm [shape: f32[32,40], index: 1, kind: input, shape index: {}]   ;;  %s679_s2 = inlined_call_operand.vmem [shape: f32[16,40], index: 2, kind: input, shape index: {}]   ;;  %s680_s3 = inlined_call_operand.vmem [shape: f32[8,80], index: 3, kind: output, shape index: {0}]   ;;  %s681_s4 = inlined_call_operand.vmem [shape: f32[1,1,80], index: 4, kind: output, shape index: {1}]   ;;  %s682_s5 = inlined_call_operand.vmem [shape: f32[1,1,80], index: 5, kind: output, shape index: {2}]  }
   0x1   :  { %s19_s19 = sshll.u32 %s572_s18, 4  ;;  %s20_s19 = int_to_ptr.vmem [resolvable:$true] %s19_s19 }
   0x2   :  { %s558_s20 = scalar_lea.vmem %s20_s19, 512  ;;  %p563_p1 = scmp.lt.s32.totalorder %s20_s19, %s20_s19 }
   0x3   :  { %p559_p0 = scmp.ne.s32.totalorder %s20_s19, %s558_s20  ;;  %p564_p2 = scmp.lt.s32.totalorder %s558_s20, %s558_s20 }
   0x5   :  { %p565_p3 = por %p564_p2, %p563_p1 }
   0x7   :  { %p566_p4 = pnand %p565_p3, %p559_p0 }
   0x9   :  { %569 = shalt.err (!%p566_p4)
}
   0xa   :  { %s573_s21 = smov 128   ;;  %s574_s22 = smov 8  }
   0xb   :  { %25 = dma.hbm_to_vmem [thread:$0]  %s678_s1, 512, %s20_s19, [#allocation3], %s573_s21, %s573_s21, %s574_s22  }
   0xc   :  { %570 = dma.done.wait [#allocation3], 512  }
   0xd   :  { %571 = vsyncadd [#allocation3], 4294966784  ;;  %v575_v0 = vmov 0.0   ;;  %vm576_vm0 = vmmov 0   ;;  %v623_v1 = vld [vmem:[%s677_s0] sm:$0xff]  ;;  %v37_v2 = vld [vmem:[#allocation2 + $0x18] sm:$0xff] }
   0xe   :  { %482 = vmatprep.subr.mxu0 %v575_v0  ;;  %493 = vmatprep.subr.mxu1 %v575_v0  ;;  %v36_v3 = vld [vmem:[#allocation2 + $0x10] sm:$0xff]  ;;  %s577_s27 = smov 112   ;;  %v33_v4 = vld [vmem:[%s679_s2 + $0x8] sm:$0xff]  ;;  %v32_v6 = vld [vmem:[%s679_s2] sm:$0xff]  ;;  %vm112_vm1 = vcmask 130048   ;;  %vm38_vm2 = vcmask 261120  }
   0xf   :  { %490 = vmatprep.mubr.msk.f32.mxu0 %vm576_vm0, %v575_v0  ;;  %497 = vmatprep.mubr.msk.f32.mxu1 %vm576_vm0, %v575_v0  ;;  %v35_v5 = vld [vmem:[#allocation2 + $0x8] sm:$0xff]  ;;  %v34_v7 = vld [vmem:[#allocation2] sm:$0xff]  ;;  %s578_s0 = smov 120   ;;  %s579_s2 = smov 104   ;;  %vm261_vm3 = vcmask 64512   ;;  %vm431_vm4 = vcmask 392192  }
  0x10   :  { %186 = vrot.lane.b32.xlu0 %v623_v1, %s577_s27  ;;  %483 = vmatpush3.msra.mxu0 %v37_v2  ;;  %s580_s6 = smov 96   ;;  %s581_s7 = smov 16   ;;  %vm433_vm5 = vcmask 523264   ;;  %vm435_vm6 = vcmask 654336   ;;  %vm444_vm7 = vcmask 647168  }
  0x11   :  { %484 = vmatprep.subr.mxu0 %v575_v0  ;;  %494 = vmatpush3.msra.mxu1 %v33_v4  ;;  %s582_s8 = smov 32   ;;  %s583_s9 = smov 64  }
  0x12   :  { %485 = vmatpush3.msra.mxu0 %v36_v3  ;;  %495 = vmatprep.subr.mxu1 %v575_v0  ;;  %s584_s10 = smov 48  }
  0x13   :  { %486 = vmatprep.subr.mxu0 %v575_v0  ;;  %496 = vmatpush3.msra.mxu1 %v32_v6 }
  0x14   :  { %487 = vmatpush3.msra.mxu0 %v35_v5  ;;  %498 = vmatmul.mubr.msk.f32.vlgmr.msra.gmra.mxu1 %vm112_vm1, %v623_v1 }
  0x15   :  { %488 = vmatprep.subr.mxu0 %v575_v0  ;;  %500 = vmatprep.subr.mxu1 %v575_v0 }
  0x16   :  { %489 = vmatpush3.msra.mxu0 %v34_v7  ;;  %501 = vmatpush3.msra.mxu1 %v33_v4 }
  0x17   :  { %491 = vmatmul.mubr.msk.f32.vlgmr.msra.gmra.mxu0 %vm38_vm2, %v623_v1  ;;  %502 = vmatprep.subr.mxu1 %v575_v0 }
  0x18   :  { %503 = vmatpush3.msra.mxu1 %v32_v6  ;;  %504 = vmatprep.mubr.msk.f32.mxu1 %vm576_vm0, %v575_v0 }
  0x82   :  { %v187_v8 = vpop.permute.xlu0 %186 }
  0x83   :  { %505 = vmatmul.mubr.msk.f32.vlgmr.msra.gmra.mxu1 %vm112_vm1, %v187_v8 }
  0xd4   :  { %v181_v9 = vpop.f32.mrf.mxu1 }
  0xd6   :  { %v499_v10 = vpop.f32.mrf.mxu1 }
  0xd7   :  { %v108_v11 = vpop.f32.mrf.mxu0 }
  0xd8   :  { %v185_v12 = vmul.f32 %v181_v9, %v108_v11 }
  0xd9   :  { %v492_v13 = vpop.f32.mrf.mxu0 }
  0xda   :  { %320 = vrot.lane.b32.xlu1 %v185_v12, %s577_s27  ;;  %288 = vrot.lane.b32.xlu0 %v185_v12, %s578_s0  ;;  %v262_v20 = vsel %vm261_vm3, %v185_v12, 0.0 }
  0xde   :  { %351 = vrot.lane.b32.xlu1 %v185_v12, %s579_s2 }
 0x143   :  { %v256_v14 = vpop.f32.mrf.mxu1 }
 0x144   :  { %v260_v15 = vmul.f32 %v256_v14, %v108_v11 }
 0x145   :  { %v506_v16 = vpop.f32.mrf.mxu1 }
 0x146   :  { %296 = vrot.lane.b32.xlu1 %v260_v15, %s578_s0  ;;  %327 = vrot.lane.b32.xlu0 %v260_v15, %s577_s27  ;;  %v266_v32 = vsel %vm261_vm3, %v260_v15, 0.0 }
 0x14a   :  { %382 = vrot.lane.b32.xlu1 %v185_v12, %s580_s6  ;;  %358 = vrot.lane.b32.xlu0 %v260_v15, %s579_s2 }
 0x14c   :  { %v289_v17 = vpop.permute.xlu0 %288  ;;  %v321_v18 = vpop.permute.xlu1 %320 }
 0x14d   :  { %v291_v19 = vsel %vm261_vm3, %v289_v17, 0.0  ;;  %v323_v21 = vsel %vm261_vm3, %v321_v18, 0.0 }
 0x14e   :  { %389 = vrot.lane.b32.xlu0 %v260_v15, %s580_s6 }
 0x150   :  { %v352_v22 = vpop.permute.xlu1 %351 }
 0x151   :  { %v354_v23 = vsel %vm261_vm3, %v352_v22, 0.0 }
 0x16d   :  { %292 = vadd.xlane.f32.xlu0 %v291_v19 }
 0x16e   :  { %263 = vadd.xlane.f32.xlu1 %v262_v20 }
 0x172   :  { %324 = vadd.xlane.f32.xlu1 %v323_v21 }
 0x176   :  { %355 = vadd.xlane.f32.xlu1 %v354_v23 }
 0x1b8   :  { %v297_v24 = vpop.permute.xlu1 %296  ;;  %v328_v25 = vpop.permute.xlu0 %327 }
 0x1b9   :  { %v299_v26 = vsel %vm261_vm3, %v297_v24, 0.0  ;;  %v330_v29 = vsel %vm261_vm3, %v328_v25, 0.0 }
 0x1ba   :  { %300 = vadd.xlane.f32.xlu0 %v299_v26 }
 0x1bc   :  { %v383_v27 = vpop.permute.xlu1 %382  ;;  %v359_v28 = vpop.permute.xlu0 %358 }
 0x1bd   :  { %v385_v30 = vsel %vm261_vm3, %v383_v27, 0.0  ;;  %v361_v31 = vsel %vm261_vm3, %v359_v28, 0.0 }
 0x1be   :  { %331 = vadd.xlane.f32.xlu0 %v330_v29  ;;  %386 = vadd.xlane.f32.xlu1 %v385_v30 }
 0x1c0   :  { %v390_v33 = vpop.permute.xlu0 %389 }
 0x1c1   :  { %v392_v34 = vsel %vm261_vm3, %v390_v33, 0.0 }
 0x1c2   :  { %362 = vadd.xlane.f32.xlu0 %v361_v31  ;;  %267 = vadd.xlane.f32.xlu1 %v266_v32 }
 0x1c6   :  { %393 = vadd.xlane.f32.xlu0 %v392_v34 }
 0x1f6   :  { %v293_v37 = vpop.xlane.xlu0 %292 }
 0x1f7   :  { %v264_v35 = vpop.xlane.xlu1 %263  ;;  %v294_v40 = vmul.f32 0.35355338, %v293_v37 }
 0x1f8   :  { %v265_v58 = vmul.f32 0.35355338, %v264_v35 }
 0x1fb   :  { %v325_v36 = vpop.xlane.xlu1 %324 }
 0x1fc   :  { %v326_v45 = vmul.f32 0.35355338, %v325_v36 }
 0x1ff   :  { %v356_v38 = vpop.xlane.xlu1 %355 }
 0x200   :  { %v357_v52 = vmul.f32 0.35355338, %v356_v38 }
 0x243   :  { %v301_v39 = vpop.xlane.xlu0 %300 }
 0x244   :  { %v302_v41 = vmul.f32 0.35355338, %v301_v39 }
 0x246   :  { %v303_v42 = vmax.f32 %v294_v40, %v302_v41 }
 0x247   :  { %v332_v43 = vpop.xlane.xlu0 %331  ;;  %v387_v44 = vpop.xlane.xlu1 %386 }
 0x248   :  { %v304_v46 = vsub.f32 %v294_v40, %v303_v42  ;;  %v307_v47 = vsub.f32 %v302_v41, %v303_v42  ;;  %v333_v48 = vmul.f32 0.35355338, %v332_v43  ;;  %v388_v63 = vmul.f32 0.35355338, %v387_v44 }
 0x24a   :  { %v305_v49 = vmul.f32 1.442695, %v304_v46  ;;  %v308_v50 = vmul.f32 1.442695, %v307_v47  ;;  %v334_v51 = vmax.f32 %v326_v45, %v333_v48 }
 0x24b   :  { %v363_v53 = vpop.xlane.xlu0 %362  ;;  %v268_v54 = vpop.xlane.xlu1 %267 }
 0x24c   :  { %520 = vpow2.f32 %v305_v49  ;;  %v335_v55 = vsub.f32 %v326_v45, %v334_v51  ;;  %v338_v56 = vsub.f32 %v333_v48, %v334_v51  ;;  %v364_v57 = vmul.f32 0.35355338, %v363_v53 }
 0x24d   :  { %522 = vpow2.f32 %v308_v50  ;;  %v269_v59 = vmul.f32 0.35355338, %v268_v54 }
 0x24e   :  { %v336_v60 = vmul.f32 1.442695, %v335_v55  ;;  %v339_v61 = vmul.f32 1.442695, %v338_v56  ;;  %v365_v62 = vmax.f32 %v357_v52, %v364_v57 }
 0x24f   :  { %v270_v0 = vmax.f32 %v265_v58, %v269_v59  ;;  %v394_v2 = vpop.xlane.xlu0 %393 }
 0x250   :  { %524 = vpow2.f32 %v336_v60  ;;  %v366_v3 = vsub.f32 %v357_v52, %v365_v62  ;;  %v369_v4 = vsub.f32 %v364_v57, %v365_v62  ;;  %v395_v5 = vmul.f32 0.35355338, %v394_v2 }
 0x251   :  { %526 = vpow2.f32 %v339_v61  ;;  %v271_v6 = vsub.f32 %v265_v58, %v270_v0  ;;  %v274_v7 = vsub.f32 %v269_v59, %v270_v0 }
 0x252   :  { %v367_v8 = vmul.f32 1.442695, %v366_v3  ;;  %v370_v9 = vmul.f32 1.442695, %v369_v4  ;;  %v396_v10 = vmax.f32 %v388_v63, %v395_v5 }
 0x253   :  { %v272_v11 = vmul.f32 1.442695, %v271_v6  ;;  %v275_v12 = vmul.f32 1.442695, %v274_v7 }
 0x254   :  { %528 = vpow2.f32 %v367_v8  ;;  %v397_v13 = vsub.f32 %v388_v63, %v396_v10  ;;  %v400_v14 = vsub.f32 %v395_v5, %v396_v10 }
 0x255   :  { %530 = vpow2.f32 %v370_v9 }
 0x256   :  { %532 = vpow2.f32 %v272_v11  ;;  %v398_v15 = vmul.f32 1.442695, %v397_v13  ;;  %v401_v16 = vmul.f32 1.442695, %v400_v14 }
 0x257   :  { %534 = vpow2.f32 %v275_v12 }
 0x258   :  { %536 = vpow2.f32 %v398_v15 }
 0x259   :  { %v521_v17 = vpop.eup %520  ;;  %538 = vpow2.f32 %v401_v16 }
 0x25a   :  { %v523_v18 = vpop.eup %522  ;;  %v311_v37 = vmul.f32 %v521_v17, %v623_v1 }
 0x25b   :  { %v312_v19 = vmul.f32 %v523_v18, %v623_v1  ;;  %v310_v20 = vadd.f32 %v523_v18, %v521_v17 }
 0x25d   :  { %v525_v21 = vpop.eup %524  ;;  %314 = vrot.lane.b32.xlu1 %v312_v19, %s577_s27  ;;  %540 = vrcp.f32 %v310_v20 }
 0x25e   :  { %v527_v22 = vpop.eup %526  ;;  %v342_v42 = vmul.f32 %v525_v21, %v623_v1 }
 0x25f   :  { %v343_v23 = vmul.f32 %v527_v22, %v623_v1  ;;  %v341_v24 = vadd.f32 %v527_v22, %v525_v21 }
 0x261   :  { %v529_v25 = vpop.eup %528  ;;  %345 = vrot.lane.b32.xlu1 %v343_v23, %s577_s27  ;;  %542 = vrcp.f32 %v341_v24 }
 0x262   :  { %v531_v26 = vpop.eup %530  ;;  %v373_v54 = vmul.f32 %v529_v25, %v623_v1 }
 0x263   :  { %v533_v27 = vpop.eup %532  ;;  %v372_v28 = vadd.f32 %v531_v26, %v529_v25  ;;  %v374_v36 = vmul.f32 %v531_v26, %v623_v1 }
 0x264   :  { %v535_v29 = vpop.eup %534  ;;  %v278_v47 = vmul.f32 %v533_v27, %v623_v1 }
 0x265   :  { %v537_v30 = vpop.eup %536  ;;  %v279_v31 = vmul.f32 %v535_v29, %v623_v1  ;;  %v277_v32 = vadd.f32 %v535_v29, %v533_v27 }
 0x266   :  { %v539_v33 = vpop.eup %538  ;;  %v404_v50 = vmul.f32 %v537_v30, %v623_v1 }
 0x267   :  { %281 = vrot.lane.b32.xlu0 %v279_v31, %s577_s27  ;;  %v405_v34 = vmul.f32 %v539_v33, %v623_v1  ;;  %v403_v35 = vadd.f32 %v539_v33, %v537_v30  ;;  %544 = vrcp.f32 %v277_v32 }
 0x269   :  { %407 = vrot.lane.b32.xlu1 %v405_v34, %s577_s27  ;;  %546 = vrcp.f32 %v403_v35 }
 0x26a   :  { %v541_v40 = vpop.eup %540  ;;  %548 = vrcp.f32 %v372_v28 }
 0x26b   :  { %376 = vrot.lane.b32.xlu0 %v374_v36, %s577_s27 }
 0x26e   :  { %v543_v45 = vpop.eup %542 }
 0x274   :  { %v545_v51 = vpop.eup %544 }
 0x276   :  { %v547_v56 = vpop.eup %546 }
 0x277   :  { %v549_v60 = vpop.eup %548 }
 0x2cf   :  { %v315_v38 = vpop.permute.xlu1 %314 }
 0x2d0   :  { %v317_v39 = vadd.f32 %v315_v38, %v311_v37 }
 0x2d2   :  { %v319_v41 = vmul.f32 %v541_v40, %v317_v39 }
 0x2d3   :  { %v346_v43 = vpop.permute.xlu1 %345 }
 0x2d4   :  { %v348_v44 = vadd.f32 %v346_v43, %v342_v42  ;;  %414 = vrot.lane.b32.xlu0 %v319_v41, %s581_s7 }
 0x2d6   :  { %v350_v46 = vmul.f32 %v543_v45, %v348_v44 }
 0x2d8   :  { %418 = vrot.lane.b32.xlu1 %v350_v46, %s582_s8 }
 0x2d9   :  { %v282_v48 = vpop.permute.xlu0 %281 }
 0x2da   :  { %v284_v49 = vadd.f32 %v282_v48, %v278_v47 }
 0x2db   :  { %v408_v52 = vpop.permute.xlu1 %407 }
 0x2dc   :  { %v286_v53 = vmul.f32 %v545_v51, %v284_v49  ;;  %v410_v55 = vadd.f32 %v408_v52, %v404_v50 }
 0x2dd   :  { %v377_v57 = vpop.permute.xlu0 %376 }
 0x2de   :  { %v379_v58 = vadd.f32 %v377_v57, %v373_v54  ;;  %v412_v59 = vmul.f32 %v547_v56, %v410_v55 }
 0x2e0   :  { %v381_v61 = vmul.f32 %v549_v60, %v379_v58  ;;  %426 = vrot.lane.b32.xlu1 %v412_v59, %s583_s9 }
 0x2e2   :  { %422 = vrot.lane.b32.xlu0 %v381_v61, %s584_s10 }
 0x346   :  { %v415_v63 = vpop.permute.xlu0 %414 }
 0x347   :  { %v429_v0 = vsel %vm112_vm1, %v286_v53, %v415_v63 }
 0x34a   :  { %v419_v62 = vpop.permute.xlu1 %418 }
 0x34b   :  { %v430_v1 = vsel %vm38_vm2, %v429_v0, %v419_v62 }
 0x352   :  { %v427_v2 = vpop.permute.xlu1 %426 }
 0x354   :  { %v423_v3 = vpop.permute.xlu0 %422 }
 0x355   :  { %v432_v4 = vsel %vm431_vm4, %v430_v1, %v423_v3 }
 0x356   :  { %v434_v5 = vsel %vm433_vm5, %v432_v4, %v427_v2 }
 0x357   :  { %436 = vst.msk [vmem:[%s680_s3] sm:$0xff] %vm435_vm6, %v434_v5  ;;  %v437_v6 = vsel %vm435_vm6, %v434_v5, 0.0  ;;  %v446_v7 = vmul.f32 %v434_v5, %v434_v5 }
 0x358   :  { %v438_v8 = vrot.slane %v437_v6, 4 }
 0x359   :  { %v447_v9 = vsel %vm435_vm6, %v446_v7, 0.0 }
 0x35a   :  { %v439_v10 = vadd.f32 %v438_v8, %v437_v6  ;;  %v448_v11 = vrot.slane %v447_v9, 4 }
 0x35c   :  { %v440_v12 = vrot.slane %v439_v10, 2  ;;  %v449_v13 = vadd.f32 %v448_v11, %v447_v9 }
 0x35e   :  { %v441_v14 = vadd.f32 %v440_v12, %v439_v10  ;;  %v450_v15 = vrot.slane %v449_v13, 2 }
 0x360   :  { %v442_v16 = vrot.slane %v441_v14, 1  ;;  %v451_v17 = vadd.f32 %v450_v15, %v449_v13 }
 0x362   :  { %v443_v18 = vadd.f32 %v442_v16, %v441_v14  ;;  %v452_v19 = vrot.slane %v451_v17, 1 }
 0x364   :  { %445 = vst.msk [vmem:[%s681_s4] sm:$0x1] %vm444_vm7, %v443_v18  ;;  %v453_v20 = vadd.f32 %v452_v19, %v451_v17 }
 0x366   :  { %454 = vst.msk [vmem:[%s682_s5] sm:$0x1] %vm444_vm7, %v453_v20 }
 0x367   :  { %467 = vsyncpa [#allocation3], 1 }

</bundles_post_ra>
